<compile_context>
chip_gen: v5e
topology: v5e:2x2
jax: 0.10.0
libtpu: 0.0.40
codegen_flags: <defaults>
</compile_context>

<pallas_src>
import numpy as np

import jax
import jax.numpy as jnp
from jax.experimental import pallas as pl
from jax.experimental.pallas import tpu as pltpu

SELU_ALPHA = 1.6732632423543772848170429916717
SELU_SCALE = 1.0507009873554804934193349852946


def _selu(x):
    # f32 elementwise; exp() on the (discarded) positive branch is inf, never NaN.
    return SELU_SCALE * jnp.where(x > 0, x, SELU_ALPHA * (jnp.exp(x) - 1.0))


def _round_up(v, m):
    return ((v + m - 1) // m) * m


# ----------------------------------------------------------------------------
# Per-generation sizing
# ----------------------------------------------------------------------------
def _vmem_sizes():
    """(vmem_limit_bytes to request, working budget for TB sizing)."""
    phys = 64 << 20  # conservative default: v7x has 64 MiB per TensorCore
    try:
        info = pltpu.get_tpu_info()
        phys = max(int(info.vmem_capacity_bytes), 32 << 20)
    except Exception:
        pass
    limit = min(int(phys * 3 // 4), 112 << 20)   # v5e/v6e -> 96 MiB, v7x -> 48 MiB
    budget = limit // 2                          # >= 2x headroom for pipeline/spills
    return limit, budget


def _per_seq_vmem_bytes(n_positions, n_input_features, kernel_size, mm_bytes):
    """Honest per-sequence VMEM cost of one grid step (incl. lane padding)."""
    lane = 128
    c_pad = _round_up(max(n_input_features, 1), lane)
    # Double-buffered raw input block (position-major, lane-padded in VMEM).
    input_bytes = 2 * n_positions * c_pad * mm_bytes
    # Resident activation working set: f32 accumulator + matmul result +
    # SELU temporaries + bf16 copy for the next layer, all 128-lane padded.
    l_out0 = max(n_positions - kernel_size + 1, 1)
    act_bytes = l_out0 * lane * (5 * 4 + mm_bytes)
    # Double-buffered (TB, 128) f32 output block.
    out_bytes = 2 * lane * 4
    return input_bytes + act_bytes + out_bytes


def _choose_tb(n_sequences, per_seq_bytes, vmem_budget_bytes, *,
               seq_align=32, min_steps=8):
    """Sequences per grid step.

    Multiple of 32 (clean f32/bf16 sublane alignment for the shifted tap
    windows), capped by the per-generation VMEM budget, capped so there are
    >= ~min_steps grid steps when there is enough work (keeps both v7x
    TensorCores fed and the DMA pipeline full), then nudged toward a
    near-divisor of N so the last block is not mostly zero padding.
    """
    cap = max(seq_align,
              (vmem_budget_bytes // max(per_seq_bytes, 1)) // seq_align * seq_align)
    if n_sequences >= min_steps * seq_align:
        cap = min(cap, _round_up(pl.cdiv(n_sequences, min_steps), seq_align))
    tb = min(cap, _round_up(n_sequences, seq_align))
    steps = pl.cdiv(n_sequences, tb)
    tb = _round_up(pl.cdiv(n_sequences, steps), seq_align)
    return max(seq_align, tb)


# ----------------------------------------------------------------------------
# Kernel
# ----------------------------------------------------------------------------
def _fused_cnn_kernel(*refs):
    """One block of TB sequences per grid step.

    refs = (x_ref, w0, b0, w1, b1, ..., o_ref)
      x_ref : (L, TB, C)        raw position-major input block (mm dtype)
      w_i   : (K, C_in_i, F_i)  conv taps (mm dtype); last layer F padded to 128
      b_i   : (1, F_i)          float32
      o_ref : (TB, F_last)      float32 (lane-dense: F_last is a 128 multiple)
    Row ordering everywhere is position-major: row p*TB + s == (position p, seq s).
    """
    x_ref, o_ref = refs[0], refs[-1]
    params = refs[1:-1]
    n_layers = len(params) // 2
    l_in, tb, _ = x_ref.shape
    mm_dtype = x_ref.dtype

    act = None        # previous layer's activation (value), position-major rows
    l_cur = l_in
    for li in range(n_layers):
        w_ref = params[2 * li]        # (K, C_in, F_out)
        b_ref = params[2 * li + 1]    # (1, F_out) f32
        ksize = w_ref.shape[0]
        l_out = l_cur - ksize + 1
        m = l_out * tb

        acc = None
        for k in range(ksize):
            if li == 0:
                # In-kernel im2col: tap k of the conv == the aligned,
                # position-major row window [k*TB, (k+l_out)*TB) of the raw
                # input block (no HBM-side im2col slab).
                lhs = x_ref[k:k + l_out, :, :].reshape(m, w_ref.shape[1])
            else:
                lhs = act[k * tb:(k + l_out) * tb, :]
            part = jnp.dot(lhs, w_ref[k], preferred_element_type=jnp.float32)
            acc = part if acc is None else acc + part

        z = _selu(acc + b_ref[...])   # bias + SELU in f32 (VPU/EUP)
        l_cur = l_out
        # bf16 operands for the next layer's MXU matmuls; keep last layer f32.
        act = z.astype(mm_dtype) if li + 1 < n_layers else z

    # Max over positions for every sequence.  The last layer's output lanes
    # were padded to a multiple of 128, so this store is an unmasked dense one.
    o_ref[...] = jnp.max(act.reshape(l_cur, tb, act.shape[-1]),
                         axis=0).astype(o_ref.dtype)


# ----------------------------------------------------------------------------
# Wrapper
# ----------------------------------------------------------------------------
def sequence_embedding_cnn_forward(inputs, weights, biases, *,
                                   compute_dtype=jnp.bfloat16):
    """inputs (N, L, C) -> (N, F).  weights[i]: (K, C_in_i, F), biases[i]: (F,)."""
    n, l, c = inputs.shape
    n_layers = len(weights)
    kernel_size = int(weights[0].shape[0])
    f = int(weights[0].shape[-1])
    l_final = l - n_layers * (kernel_size - 1)
    if l_final <= 0:
        raise ValueError("n_positions too small for kernel_size / n_layers")

    lane = 128
    f_pad = _round_up(f, lane)           # lane-dense output (pad F in output only)

    mm_dtype = jnp.dtype(compute_dtype)
    vmem_limit, vmem_budget = _vmem_sizes()
    per_seq = _per_seq_vmem_bytes(l, c, kernel_size, mm_dtype.itemsize)
    tb = _choose_tb(n, per_seq, vmem_budget)
    n_pad = pl.cdiv(n, tb) * tb

    # Position-major (L, N, C): every conv tap becomes an 8-aligned row window
    # of the on-chip block; im2col happens inside the kernel (HBM traffic ~1x).
    x = jnp.transpose(inputs.astype(mm_dtype), (1, 0, 2))
    if n_pad != n:
        x = jnp.pad(x, ((0, 0), (0, n_pad - n), (0, 0)))  # zero sequences

    operands = [x]
    in_specs = [pl.BlockSpec((l, tb, c), lambda i: (0, i, 0))]
    for li, (w, b) in enumerate(zip(weights, biases)):
        w_mm = jnp.asarray(w).astype(mm_dtype)               # (K, C_in, F)
        b2 = jnp.asarray(b, jnp.float32).reshape(1, -1)      # (1, F)
        if li == n_layers - 1 and f_pad != f:
            w_mm = jnp.pad(w_mm, ((0, 0), (0, 0), (0, f_pad - f)))
            b2 = jnp.pad(b2, ((0, 0), (0, f_pad - f)))
        operands += [w_mm, b2]
        in_specs += [pl.BlockSpec(w_mm.shape, lambda i: (0, 0, 0)),
                     pl.BlockSpec(b2.shape, lambda i: (0, 0))]

    # Advisory cost estimate so XLA schedules sensibly around the custom call.
    flops, trans = 0, 0
    l_cur, c_in = l, c
    for _ in range(n_layers):
        l_out = l_cur - kernel_size + 1
        m = n_pad * l_out
        flops += 2 * m * kernel_size * c_in * f + 4 * m * f
        trans += m * f
        l_cur, c_in = l_out, f
    bytes_accessed = (sum(int(op.size) * op.dtype.itemsize for op in operands)
                      + n_pad * f_pad * 4)

    out = pl.pallas_call(
        _fused_cnn_kernel,
        out_shape=jax.ShapeDtypeStruct((n_pad, f_pad), jnp.float32),
        grid_spec=pltpu.PrefetchScalarGridSpec(
            num_scalar_prefetch=0,
            grid=(n_pad // tb,),
            in_specs=in_specs,
            out_specs=pl.BlockSpec((tb, f_pad), lambda i: (i, 0)),
        ),
        compiler_params=pltpu.CompilerParams(
            dimension_semantics=("parallel",),
            vmem_limit_bytes=int(vmem_limit)),
        cost_estimate=pl.CostEstimate(
            flops=int(flops), transcendentals=int(trans),
            bytes_accessed=int(bytes_accessed)),
    )(*operands)
    return out[:n, :f]


class SequenceEmbeddingCNNPallas:
    """JAX/Pallas equivalent of DeepRC's SequenceEmbeddingCNN (`h()` in paper)."""

    def __init__(self, n_input_features, kernel_size=9, n_kernels=32,
                 n_layers=1, seed=1, compute_dtype=jnp.bfloat16):
        if n_layers <= 0:
            raise ValueError(
                f"Number of layers n_layers must be > 0 but is {n_layers}")
        self.kernel_size = kernel_size
        self.n_kernels = n_kernels
        self.n_layers = n_layers
        self.compute_dtype = compute_dtype

        key = jax.random.PRNGKey(seed)
        self.weights = []   # per layer: (K, C_in, F) float32 (tap-major)
        self.biases = []    # per layer: (F,)       float32
        c_in = n_input_features
        for _ in range(n_layers):
            key, kw, kb = jax.random.split(key, 3)
            # torch: conv.weight (F, C_in, K) ~ N(0, sqrt(1 / (F*C_in*K)))
            std = (1.0 / (n_kernels * c_in * kernel_size)) ** 0.5
            w = std * jax.random.normal(
                kw, (kernel_size, c_in, n_kernels), dtype=jnp.float32)
            # torch Conv1d default bias init: U(-1/sqrt(C_in*K), 1/sqrt(C_in*K))
            bound = 1.0 / (c_in * kernel_size) ** 0.5
            b = jax.random.uniform(kb, (n_kernels,), jnp.float32,
                                   minval=-bound, maxval=bound)
            self.weights.append(w)
            self.biases.append(b)
            c_in = n_kernels

    def __call__(self, inputs):
        """inputs (n_sequences, n_positions, n_input_features) -> (n_sequences, n_kernels)."""
        return sequence_embedding_cnn_forward(
            inputs, self.weights, self.biases, compute_dtype=self.compute_dtype)


# ----------------------------------------------------------------------------
# Reference (float64 numpy, exact conv/SELU/max semantics) and self-test
# ----------------------------------------------------------------------------
def _reference_forward(inputs_np, weights, biases, kernel_size):
    x = np.asarray(inputs_np, dtype=np.float64)
    for w, b in zip(weights, biases):
        w64 = np.asarray(w, dtype=np.float64)     # (K, C_in, F)
        b64 = np.asarray(b, dtype=np.float64)     # (F,)
        k = w64.shape[0]
        l_out = x.shape[1] - k + 1
        y = np.zeros((x.shape[0], l_out, w64.shape[-1]), dtype=np.float64)
        for kk in range(k):
            y += np.einsum("nlc,cf->nlf", x[:, kk:kk + l_out, :], w64[kk])
        y += b64
        x = SELU_SCALE * np.where(y > 0, y, SELU_ALPHA * np.expm1(y))
    return x.max(axis=1)


if __name__ == "__main__":
    key = jax.random.PRNGKey(0)

    def check(model, x, name):
        out = jax.block_until_ready(model(x))
        ref = _reference_forward(np.asarray(x), model.weights, model.biases,
                                 model.kernel_size)
        assert out.shape == ref.shape, (name, out.shape, ref.shape)
        out64 = np.asarray(out, dtype=np.float64)
        # bf16 matmul operands with f32 accumulation: ~0.5% relative error.
        assert np.allclose(out64, ref, atol=3e-2, rtol=3e-2), (
            name, float(np.max(np.abs(out64 - ref))))

    # Config A: module defaults (1 layer), batch=2, 16 positions, 8 features.
    model1 = SequenceEmbeddingCNNPallas(n_input_features=8, kernel_size=9,
                                        n_kernels=32, n_layers=1, seed=1)
    key, k1 = jax.random.split(key)
    x1 = jax.random.normal(k1, (2, 16, 8), dtype=jnp.float32)
    check(model1, x1, "A")

    # Config B: two conv+SELU layers fused into one pallas_call.
    model2 = SequenceEmbeddingCNNPallas(n_input_features=8, kernel_size=9,
                                        n_kernels=32, n_layers=2, seed=1)
    key, k2 = jax.random.split(key)
    x2 = jax.random.normal(k2, (4, 24, 8), dtype=jnp.float32)
    check(model2, x2, "B")

    # Config C: larger bag -> multiple grid steps (megacore / pipeline path).
    key, k3 = jax.random.split(key)
    x3 = jax.random.normal(k3, (320, 16, 8), dtype=jnp.float32)
    check(model1, x3, "C")

    print("KERNEL_OK")
</pallas_src>

<mosaic_0001>
module attributes {stable_mosaic.version = 11 : i64} {
  func.func @_fused_cnn_kernel(%arg0: i32, %arg1: memref<16x32x8xbf16, #tpu.memory_space<vmem>>, %arg2: memref<9x8x128xbf16, #tpu.memory_space<vmem>>, %arg3: memref<1x128xf32, #tpu.memory_space<vmem>>, %arg4: memref<32x128xf32, #tpu.memory_space<vmem>>) attributes {dimension_semantics = [#tpu.dimension_semantics<parallel>], iteration_bounds = array<i64: 1>, scalar_prefetch = 0 : i64, scratch_operands = 0 : i64, tpu.core_type = #tpu.core_type<tc>, window_params = [{transform_indices = @transform_0, window_bounds = array<i64: 16, 32, 8>}, {pipeline_mode = #tpu.pipeline_mode<synchronous>, transform_indices = @transform_1, window_bounds = array<i64: 9, 8, 128>}, {pipeline_mode = #tpu.pipeline_mode<synchronous>, transform_indices = @transform_2, window_bounds = array<i64: 1, 128>}, {transform_indices = @transform_3, window_bounds = array<i64: 32, 128>}]} {
    %c0 = arith.constant 0 : index
    %c0_0 = arith.constant 0 : index
    %c0_1 = arith.constant 0 : index
    %0 = vector.load %arg1[%c0, %c0_0, %c0_1] : memref<16x32x8xbf16, #tpu.memory_space<vmem>>, vector<8x32x8xbf16>
    %1 = vector.shape_cast %0 : vector<8x32x8xbf16> to vector<256x8xbf16>
    %c0_2 = arith.constant 0 : index
    %c0_3 = arith.constant 0 : index
    %c0_4 = arith.constant 0 : index
    %2 = vector.load %arg2[%c0_2, %c0_3, %c0_4] : memref<9x8x128xbf16, #tpu.memory_space<vmem>>, vector<1x8x128xbf16>
    %3 = vector.shape_cast %2 : vector<1x8x128xbf16> to vector<8x128xbf16>
    %cst = arith.constant dense<0.000000e+00> : vector<256x128xf32>
    %4 = tpu.matmul %1, %3, %cst {dimension_numbers = #tpu.dot_dimension_numbers<[1], [0], [0], [1], [0, 0, 1, 1], [], []>} : vector<256x8xbf16>, vector<8x128xbf16>, vector<256x128xf32> -> vector<256x128xf32>
    %c1 = arith.constant 1 : index
    %c0_5 = arith.constant 0 : index
    %c0_6 = arith.constant 0 : index
    %5 = vector.load %arg1[%c1, %c0_5, %c0_6] : memref<16x32x8xbf16, #tpu.memory_space<vmem>>, vector<8x32x8xbf16>
    %6 = vector.shape_cast %5 : vector<8x32x8xbf16> to vector<256x8xbf16>
    %c1_7 = arith.constant 1 : index
    %c0_8 = arith.constant 0 : index
    %c0_9 = arith.constant 0 : index
    %7 = vector.load %arg2[%c1_7, %c0_8, %c0_9] : memref<9x8x128xbf16, #tpu.memory_space<vmem>>, vector<1x8x128xbf16>
    %8 = vector.shape_cast %7 : vector<1x8x128xbf16> to vector<8x128xbf16>
    %cst_10 = arith.constant dense<0.000000e+00> : vector<256x128xf32>
    %9 = tpu.matmul %6, %8, %cst_10 {dimension_numbers = #tpu.dot_dimension_numbers<[1], [0], [0], [1], [0, 0, 1, 1], [], []>} : vector<256x8xbf16>, vector<8x128xbf16>, vector<256x128xf32> -> vector<256x128xf32>
    %10 = arith.addf %4, %9 : vector<256x128xf32>
    %c2 = arith.constant 2 : index
    %c0_11 = arith.constant 0 : index
    %c0_12 = arith.constant 0 : index
    %11 = vector.load %arg1[%c2, %c0_11, %c0_12] : memref<16x32x8xbf16, #tpu.memory_space<vmem>>, vector<8x32x8xbf16>
    %12 = vector.shape_cast %11 : vector<8x32x8xbf16> to vector<256x8xbf16>
    %c2_13 = arith.constant 2 : index
    %c0_14 = arith.constant 0 : index
    %c0_15 = arith.constant 0 : index
    %13 = vector.load %arg2[%c2_13, %c0_14, %c0_15] : memref<9x8x128xbf16, #tpu.memory_space<vmem>>, vector<1x8x128xbf16>
    %14 = vector.shape_cast %13 : vector<1x8x128xbf16> to vector<8x128xbf16>
    %cst_16 = arith.constant dense<0.000000e+00> : vector<256x128xf32>
    %15 = tpu.matmul %12, %14, %cst_16 {dimension_numbers = #tpu.dot_dimension_numbers<[1], [0], [0], [1], [0, 0, 1, 1], [], []>} : vector<256x8xbf16>, vector<8x128xbf16>, vector<256x128xf32> -> vector<256x128xf32>
    %16 = arith.addf %10, %15 : vector<256x128xf32>
    %c3 = arith.constant 3 : index
    %c0_17 = arith.constant 0 : index
    %c0_18 = arith.constant 0 : index
    %17 = vector.load %arg1[%c3, %c0_17, %c0_18] : memref<16x32x8xbf16, #tpu.memory_space<vmem>>, vector<8x32x8xbf16>
    %18 = vector.shape_cast %17 : vector<8x32x8xbf16> to vector<256x8xbf16>
    %c3_19 = arith.constant 3 : index
    %c0_20 = arith.constant 0 : index
    %c0_21 = arith.constant 0 : index
    %19 = vector.load %arg2[%c3_19, %c0_20, %c0_21] : memref<9x8x128xbf16, #tpu.memory_space<vmem>>, vector<1x8x128xbf16>
    %20 = vector.shape_cast %19 : vector<1x8x128xbf16> to vector<8x128xbf16>
    %cst_22 = arith.constant dense<0.000000e+00> : vector<256x128xf32>
    %21 = tpu.matmul %18, %20, %cst_22 {dimension_numbers = #tpu.dot_dimension_numbers<[1], [0], [0], [1], [0, 0, 1, 1], [], []>} : vector<256x8xbf16>, vector<8x128xbf16>, vector<256x128xf32> -> vector<256x128xf32>
    %22 = arith.addf %16, %21 : vector<256x128xf32>
    %c4 = arith.constant 4 : index
    %c0_23 = arith.constant 0 : index
    %c0_24 = arith.constant 0 : index
    %23 = vector.load %arg1[%c4, %c0_23, %c0_24] : memref<16x32x8xbf16, #tpu.memory_space<vmem>>, vector<8x32x8xbf16>
    %24 = vector.shape_cast %23 : vector<8x32x8xbf16> to vector<256x8xbf16>
    %c4_25 = arith.constant 4 : index
    %c0_26 = arith.constant 0 : index
    %c0_27 = arith.constant 0 : index
    %25 = vector.load %arg2[%c4_25, %c0_26, %c0_27] : memref<9x8x128xbf16, #tpu.memory_space<vmem>>, vector<1x8x128xbf16>
    %26 = vector.shape_cast %25 : vector<1x8x128xbf16> to vector<8x128xbf16>
    %cst_28 = arith.constant dense<0.000000e+00> : vector<256x128xf32>
    %27 = tpu.matmul %24, %26, %cst_28 {dimension_numbers = #tpu.dot_dimension_numbers<[1], [0], [0], [1], [0, 0, 1, 1], [], []>} : vector<256x8xbf16>, vector<8x128xbf16>, vector<256x128xf32> -> vector<256x128xf32>
    %28 = arith.addf %22, %27 : vector<256x128xf32>
    %c5 = arith.constant 5 : index
    %c0_29 = arith.constant 0 : index
    %c0_30 = arith.constant 0 : index
    %29 = vector.load %arg1[%c5, %c0_29, %c0_30] : memref<16x32x8xbf16, #tpu.memory_space<vmem>>, vector<8x32x8xbf16>
    %30 = vector.shape_cast %29 : vector<8x32x8xbf16> to vector<256x8xbf16>
    %c5_31 = arith.constant 5 : index
    %c0_32 = arith.constant 0 : index
    %c0_33 = arith.constant 0 : index
    %31 = vector.load %arg2[%c5_31, %c0_32, %c0_33] : memref<9x8x128xbf16, #tpu.memory_space<vmem>>, vector<1x8x128xbf16>
    %32 = vector.shape_cast %31 : vector<1x8x128xbf16> to vector<8x128xbf16>
    %cst_34 = arith.constant dense<0.000000e+00> : vector<256x128xf32>
    %33 = tpu.matmul %30, %32, %cst_34 {dimension_numbers = #tpu.dot_dimension_numbers<[1], [0], [0], [1], [0, 0, 1, 1], [], []>} : vector<256x8xbf16>, vector<8x128xbf16>, vector<256x128xf32> -> vector<256x128xf32>
    %34 = arith.addf %28, %33 : vector<256x128xf32>
    %c6 = arith.constant 6 : index
    %c0_35 = arith.constant 0 : index
    %c0_36 = arith.constant 0 : index
    %35 = vector.load %arg1[%c6, %c0_35, %c0_36] : memref<16x32x8xbf16, #tpu.memory_space<vmem>>, vector<8x32x8xbf16>
    %36 = vector.shape_cast %35 : vector<8x32x8xbf16> to vector<256x8xbf16>
    %c6_37 = arith.constant 6 : index
    %c0_38 = arith.constant 0 : index
    %c0_39 = arith.constant 0 : index
    %37 = vector.load %arg2[%c6_37, %c0_38, %c0_39] : memref<9x8x128xbf16, #tpu.memory_space<vmem>>, vector<1x8x128xbf16>
    %38 = vector.shape_cast %37 : vector<1x8x128xbf16> to vector<8x128xbf16>
    %cst_40 = arith.constant dense<0.000000e+00> : vector<256x128xf32>
    %39 = tpu.matmul %36, %38, %cst_40 {dimension_numbers = #tpu.dot_dimension_numbers<[1], [0], [0], [1], [0, 0, 1, 1], [], []>} : vector<256x8xbf16>, vector<8x128xbf16>, vector<256x128xf32> -> vector<256x128xf32>
    %40 = arith.addf %34, %39 : vector<256x128xf32>
    %c7 = arith.constant 7 : index
    %c0_41 = arith.constant 0 : index
    %c0_42 = arith.constant 0 : index
    %41 = vector.load %arg1[%c7, %c0_41, %c0_42] : memref<16x32x8xbf16, #tpu.memory_space<vmem>>, vector<8x32x8xbf16>
    %42 = vector.shape_cast %41 : vector<8x32x8xbf16> to vector<256x8xbf16>
    %c7_43 = arith.constant 7 : index
    %c0_44 = arith.constant 0 : index
    %c0_45 = arith.constant 0 : index
    %43 = vector.load %arg2[%c7_43, %c0_44, %c0_45] : memref<9x8x128xbf16, #tpu.memory_space<vmem>>, vector<1x8x128xbf16>
    %44 = vector.shape_cast %43 : vector<1x8x128xbf16> to vector<8x128xbf16>
    %cst_46 = arith.constant dense<0.000000e+00> : vector<256x128xf32>
    %45 = tpu.matmul %42, %44, %cst_46 {dimension_numbers = #tpu.dot_dimension_numbers<[1], [0], [0], [1], [0, 0, 1, 1], [], []>} : vector<256x8xbf16>, vector<8x128xbf16>, vector<256x128xf32> -> vector<256x128xf32>
    %46 = arith.addf %40, %45 : vector<256x128xf32>
    %c8 = arith.constant 8 : index
    %c0_47 = arith.constant 0 : index
    %c0_48 = arith.constant 0 : index
    %47 = vector.load %arg1[%c8, %c0_47, %c0_48] : memref<16x32x8xbf16, #tpu.memory_space<vmem>>, vector<8x32x8xbf16>
    %48 = vector.shape_cast %47 : vector<8x32x8xbf16> to vector<256x8xbf16>
    %c8_49 = arith.constant 8 : index
    %c0_50 = arith.constant 0 : index
    %c0_51 = arith.constant 0 : index
    %49 = vector.load %arg2[%c8_49, %c0_50, %c0_51] : memref<9x8x128xbf16, #tpu.memory_space<vmem>>, vector<1x8x128xbf16>
    %50 = vector.shape_cast %49 : vector<1x8x128xbf16> to vector<8x128xbf16>
    %cst_52 = arith.constant dense<0.000000e+00> : vector<256x128xf32>
    %51 = tpu.matmul %48, %50, %cst_52 {dimension_numbers = #tpu.dot_dimension_numbers<[1], [0], [0], [1], [0, 0, 1, 1], [], []>} : vector<256x8xbf16>, vector<8x128xbf16>, vector<256x128xf32> -> vector<256x128xf32>
    %52 = arith.addf %46, %51 : vector<256x128xf32>
    %c0_53 = arith.constant 0 : index
    %c0_54 = arith.constant 0 : index
    %53 = vector.load %arg3[%c0_53, %c0_54] : memref<1x128xf32, #tpu.memory_space<vmem>>, vector<1x128xf32>
    %54 = vector.broadcast %53 : vector<1x128xf32> to vector<256x128xf32>
    %55 = arith.addf %52, %54 : vector<256x128xf32>
    %cst_55 = arith.constant 0.000000e+00 : f32
    %56 = vector.broadcast %cst_55 : f32 to vector<256x128xf32>
    %57 = arith.cmpf ogt, %55, %56 : vector<256x128xf32>
    %58 = math.exp %55 : vector<256x128xf32>
    %cst_56 = arith.constant 1.000000e+00 : f32
    %59 = vector.broadcast %cst_56 : f32 to vector<256x128xf32>
    %60 = arith.subf %58, %59 : vector<256x128xf32>
    %cst_57 = arith.constant 1.67326319 : f32
    %61 = vector.broadcast %cst_57 : f32 to vector<256x128xf32>
    %62 = arith.mulf %61, %60 : vector<256x128xf32>
    %63 = arith.select %57, %55, %62 : vector<256x128xi1>, vector<256x128xf32>
    %cst_58 = arith.constant 1.05070102 : f32
    %64 = vector.broadcast %cst_58 : f32 to vector<256x128xf32>
    %65 = arith.mulf %64, %63 : vector<256x128xf32>
    %66 = vector.shape_cast %65 : vector<256x128xf32> to vector<8x32x128xf32>
    %cst_59 = arith.constant dense<0xFF800000> : vector<32x128xf32>
    %67 = vector.multi_reduction <maximumf>, %66, %cst_59 [0] : vector<8x32x128xf32> to vector<32x128xf32>
    %c0_60 = arith.constant 0 : index
    %c0_61 = arith.constant 0 : index
    %68 = vector.load %arg4[%c0_60, %c0_61] : memref<32x128xf32, #tpu.memory_space<vmem>>, vector<32x128xf32>
    tpu.vector_store %arg4[%c0_60, %c0_61], %67 {strides = array<i32>} : memref<32x128xf32, #tpu.memory_space<vmem>>, vector<32x128xf32>,
    return
  }
  func.func @transform_0(%arg0: i32) -> (i32, i32, i32) {
    %c0_i32 = arith.constant 0 : i32
    %c0_i32_0 = arith.constant 0 : i32
    %c0_i32_1 = arith.constant 0 : i32
    return %c0_i32, %arg0, %c0_i32_0 : i32, i32, i32
  }
  func.func @transform_1(%arg0: i32) -> (i32, i32, i32) {
    %c0_i32 = arith.constant 0 : i32
    %c0_i32_0 = arith.constant 0 : i32
    %c0_i32_1 = arith.constant 0 : i32
    %c0_i32_2 = arith.constant 0 : i32
    return %c0_i32, %c0_i32_0, %c0_i32_1 : i32, i32, i32
  }
  func.func @transform_2(%arg0: i32) -> (i32, i32) {
    %c0_i32 = arith.constant 0 : i32
    %c0_i32_0 = arith.constant 0 : i32
    %c0_i32_1 = arith.constant 0 : i32
    return %c0_i32, %c0_i32_0 : i32, i32
  }
  func.func @transform_3(%arg0: i32) -> (i32, i32) {
    %c0_i32 = arith.constant 0 : i32
    %c0_i32_0 = arith.constant 0 : i32
    return %arg0, %c0_i32 : i32, i32
  }
}

</mosaic_0001>

<bundles_post_ra>
// kernel: tpu_custom_call.1
= control target key start
LH: loop header
LB: loop body
LE: loop exit
PB: predicated region body
PF: predicated region fallthrough
CT: control target
= control target key end

     0   :  { %vm213_vm0 = vcmask 1043456   ;;  %vm164_vm1 = vcmask 64512   ;;  %s5106_s0 = inlined_call_operand.vmem [shape: bf16[16,32,8], index: 0, kind: input, shape index: {}]   ;;  %s5107_s1 = inlined_call_operand.vmem [shape: bf16[9,8,128], index: 1, kind: input, shape index: {}]   ;;  %s5108_s2 = inlined_call_operand.vmem [shape: f32[1,128], index: 2, kind: input, shape index: {}]   ;;  %s5109_s3 = inlined_call_operand.hbm [shape: f32[32,128], index: 3, kind: output, shape index: {}]  }
   0x1   :  { %v2877_v0 = vld [vmem:[%s5107_s1 + $0x4] sm:$0xf]  ;;  %v3881_v1 = vld [vmem:[%s5106_s0 + $0x30] sm:$0xff]  ;;  %v3070_v5 = vld [vmem:[%s5107_s1 + $0x8] sm:$0xf] }
   0x2   :  { %v215_v2 = vsel %vm213_vm0, %v2877_v0, 0  ;;  %v3885_v3 = vld [vmem:[%s5106_s0 + $0x50] sm:$0xff]  ;;  %v690_v6 = vsel %vm213_vm0, %v3070_v5, 0  ;;  %v3183_v8 = vld [vmem:[%s5107_s1 + $0xc] sm:$0xf] }
   0x3   :  { %v3889_v4 = vld [vmem:[%s5106_s0 + $0x70] sm:$0xff]  ;;  %4005 = vmatpush.bf16.msra.mxu1 %v215_v2  ;;  %4006 = vmatpush.bf16.msra.mxu2 %v215_v2  ;;  %v48_v9 = vld [vmem:[%s5107_s1] sm:$0xf]  ;;  %v977_v10 = vsel %vm213_vm0, %v3183_v8, 0 }
   0x4   :  { %v3877_v7 = vld [vmem:[%s5106_s0 + $0x10] sm:$0xff]  ;;  %4007 = vmatpush.bf16.msra.mxu3 %v215_v2  ;;  %224 = vmatpush.bf16.msra.mxu0 %v215_v2  ;;  %v435_v12 = vsel %vm213_vm0, %v48_v9, 0 }
   0x5   :  { %v3296_v11 = vld [vmem:[%s5107_s1 + $0x10] sm:$0xf] }
   0x6   :  { %v1264_v13 = vsel %vm213_vm0, %v3296_v11, 0  ;;  %2946 = vmatmul.msk.bf16.vlgmr.msra.gmra.mxu1 %vm164_vm1, %v3881_v1  ;;  %2950 = vmatmul.msk.bf16.vlgmr.msra.gmra.mxu2 %vm164_vm1, %v3885_v3 }
   0x7   :  { %699 = vmatpush.bf16.msrb.mxu2 %v690_v6 }
   0x8   :  { %986 = vmatpush.bf16.msrb.mxu3 %v977_v10 }
   0x9   :  { %8 = vsyncpa [#allocation3], 0  ;;  %2954 = vmatmul.msk.bf16.vlgmr.msra.gmra.mxu3 %vm164_vm1, %v3889_v4  ;;  %2942 = vmatmul.msk.bf16.vlgmr.msra.gmra.mxu0 %vm164_vm1, %v3877_v7  ;;  %v3882_v14 = vld [vmem:[%s5106_s0 + $0x38] sm:$0xff]  ;;  %v3883_v18 = vld [vmem:[%s5106_s0 + $0x40] sm:$0xff]  ;;  %s2833_s17 = sshll.u32 %s5109_s3, 4  ;;  %s4104_s18 = smov 128   ;;  %s2834_s17 = int_to_ptr.hbm [resolvable:$true] %s2833_s17 }
   0xa   :  { %444 = vmatpush.bf16.msrb.mxu1 %v435_v12  ;;  %1273 = vmatpush.bf16.msrb.mxu0 %v1264_v13  ;;  %v3886_v15 = vld [vmem:[%s5106_s0 + $0x58] sm:$0xff]  ;;  %v3887_v19 = vld [vmem:[%s5106_s0 + $0x60] sm:$0xff]  ;;  %v3409_v26 = vld [vmem:[%s5107_s1 + $0x14] sm:$0xf]  ;;  %s4105_s19 = smov 8  }
   0xb   :  { %v3890_v16 = vld [vmem:[%s5106_s0 + $0x78] sm:$0xff]  ;;  %v3891_v20 = vld [vmem:[%s5106_s0 + $0x80] sm:$0xff]  ;;  %v1551_v28 = vsel %vm213_vm0, %v3409_v26, 0  ;;  %v3884_v30 = vld [vmem:[%s5106_s0 + $0x48] sm:$0xff] }
   0xc   :  { %v3878_v17 = vld [vmem:[%s5106_s0 + $0x18] sm:$0xff]  ;;  %v3879_v21 = vld [vmem:[%s5106_s0 + $0x20] sm:$0xff]  ;;  %v3888_v31 = vld [vmem:[%s5106_s0 + $0x68] sm:$0xff] }
   0xd   :  { %v3522_v22 = vld [vmem:[%s5107_s1 + $0x18] sm:$0xf]  ;;  %v3635_v23 = vld [vmem:[%s5107_s1 + $0x1c] sm:$0xf]  ;;  %v3748_v27 = vld [vmem:[%s5107_s1 + $0x20] sm:$0xf] }
   0xe   :  { %v1838_v24 = vsel %vm213_vm0, %v3522_v22, 0  ;;  %v2125_v25 = vsel %vm213_vm0, %v3635_v23, 0  ;;  %v2412_v29 = vsel %vm213_vm0, %v3748_v27, 0  ;;  %1560 = vmatpush.bf16.msra.mxu1 %v1551_v28  ;;  %v3892_v32 = vld [vmem:[%s5106_s0 + $0x88] sm:$0xff]  ;;  %v3861_v34 = vld [vmem:[%s5106_s0] sm:$0xff]  ;;  %v3909_v36 = vld [vmem:[%s5106_s0 + $0x30] sm:$0xff] }
   0xf   :  { %1847 = vmatpush.bf16.msra.mxu2 %v1838_v24  ;;  %2134 = vmatpush.bf16.msra.mxu3 %v2125_v25  ;;  %v3880_v33 = vld [vmem:[%s5106_s0 + $0x28] sm:$0xff]  ;;  %v3893_v35 = vld [vmem:[%s5106_s0 + $0x20] sm:$0xff]  ;;  %v3910_v40 = vld [vmem:[%s5106_s0 + $0x38] sm:$0xff] }
  0x10   :  { %2421 = vmatpush.bf16.msra.mxu0 %v2412_v29  ;;  %v3925_v37 = vld [vmem:[%s5106_s0 + $0x40] sm:$0xff]  ;;  %v3862_v38 = vld [vmem:[%s5106_s0 + $0x8] sm:$0xff]  ;;  %v3863_v42 = vld [vmem:[%s5106_s0 + $0x10] sm:$0xff] }
  0x11   :  { %v3894_v39 = vld [vmem:[%s5106_s0 + $0x28] sm:$0xff]  ;;  %v3895_v43 = vld [vmem:[%s5106_s0 + $0x30] sm:$0xff]  ;;  %v3911_v44 = vld [vmem:[%s5106_s0 + $0x40] sm:$0xff] }
  0x12   :  { %v3926_v41 = vld [vmem:[%s5106_s0 + $0x48] sm:$0xff]  ;;  %v3927_v45 = vld [vmem:[%s5106_s0 + $0x50] sm:$0xff]  ;;  %v3864_v46 = vld [vmem:[%s5106_s0 + $0x18] sm:$0xff] }
  0x13   :  { %v3896_v47 = vld [vmem:[%s5106_s0 + $0x38] sm:$0xff]  ;;  %v3912_v48 = vld [vmem:[%s5106_s0 + $0x48] sm:$0xff]  ;;  %v3865_v50 = vld [vmem:[%s5106_s0 + $0x20] sm:$0xff] }
  0x14   :  { %v3928_v49 = vld [vmem:[%s5106_s0 + $0x58] sm:$0xff]  ;;  %v3897_v51 = vld [vmem:[%s5106_s0 + $0x40] sm:$0xff]  ;;  %v3913_v53 = vld [vmem:[%s5106_s0 + $0x50] sm:$0xff] }
  0x15   :  { %v3929_v54 = vld [vmem:[%s5106_s0 + $0x60] sm:$0xff]  ;;  %v3866_v62 = vld [vmem:[%s5106_s0 + $0x28] sm:$0xff]  ;;  %v3914_v1 = vld [vmem:[%s5106_s0 + $0x58] sm:$0xff] }
  0x16   :  { %2947 = vmatmul.msk.bf16.gmra.mxu1 %vm164_vm1, %v3882_v14  ;;  %2951 = vmatmul.msk.bf16.gmra.mxu2 %vm164_vm1, %v3886_v15  ;;  %v3898_v63 = vld [vmem:[%s5106_s0 + $0x48] sm:$0xff]  ;;  %v3867_v10 = vld [vmem:[%s5106_s0 + $0x30] sm:$0xff]  ;;  %v3915_v13 = vld [vmem:[%s5106_s0 + $0x60] sm:$0xff] }
  0x17   :  { %v3930_v2 = vld [vmem:[%s5106_s0 + $0x68] sm:$0xff]  ;;  %v3899_v11 = vld [vmem:[%s5106_s0 + $0x50] sm:$0xff]  ;;  %v3868_v22 = vld [vmem:[%s5106_s0 + $0x38] sm:$0xff] }
  0x18   :  { %v3931_v14 = vld [vmem:[%s5106_s0 + $0x70] sm:$0xff]  ;;  %v3900_v23 = vld [vmem:[%s5106_s0 + $0x58] sm:$0xff]  ;;  %v3916_v25 = vld [vmem:[%s5106_s0 + $0x68] sm:$0xff] }
  0x19   :  { %2955 = vmatmul.msk.bf16.gmra.mxu3 %vm164_vm1, %v3890_v16  ;;  %2943 = vmatmul.msk.bf16.gmra.mxu0 %vm164_vm1, %v3878_v17  ;;  %v3932_v26 = vld [vmem:[%s5106_s0 + $0x78] sm:$0xff] }
  0x26   :  { %2948 = vmatmul.msk.bf16.gmra.mxu1 %vm164_vm1, %v3883_v18  ;;  %2952 = vmatmul.msk.bf16.gmra.mxu2 %vm164_vm1, %v3887_v19 }
  0x29   :  { %2956 = vmatmul.msk.bf16.gmra.mxu3 %vm164_vm1, %v3891_v20  ;;  %2944 = vmatmul.msk.bf16.gmra.mxu0 %vm164_vm1, %v3879_v21 }
  0x36   :  { %2949 = vmatmul.msk.bf16.gmra.mxu1 %vm164_vm1, %v3884_v30  ;;  %2953 = vmatmul.msk.bf16.gmra.mxu2 %vm164_vm1, %v3888_v31 }
  0x39   :  { %2957 = vmatmul.msk.bf16.gmra.mxu3 %vm164_vm1, %v3892_v32  ;;  %2945 = vmatmul.msk.bf16.gmra.mxu0 %vm164_vm1, %v3880_v33 }
  0x46   :  { %3022 = vmatmul.msk.bf16.vlgmr.msrb.gmra.mxu1 %vm164_vm1, %v3861_v34  ;;  %3135 = vmatmul.msk.bf16.vlgmr.msrb.gmra.mxu2 %vm164_vm1, %v3893_v35  ;;  %v3869_v34 = vld [vmem:[%s5106_s0 + $0x40] sm:$0xff] }
  0x47   :  { %v3901_v35 = vld [vmem:[%s5106_s0 + $0x60] sm:$0xff] }
  0x49   :  { %3248 = vmatmul.msk.bf16.vlgmr.msrb.gmra.mxu3 %vm164_vm1, %v3909_v36  ;;  %3361 = vmatmul.msk.bf16.vlgmr.msrb.gmra.mxu0 %vm164_vm1, %v3925_v37  ;;  %v3917_v37 = vld [vmem:[%s5106_s0 + $0x70] sm:$0xff] }
  0x56   :  { %3023 = vmatmul.msk.bf16.gmra.mxu1 %vm164_vm1, %v3862_v38  ;;  %3136 = vmatmul.msk.bf16.gmra.mxu2 %vm164_vm1, %v3894_v39  ;;  %v3933_v38 = vld [vmem:[%s5106_s0 + $0x80] sm:$0xff] }
  0x59   :  { %3249 = vmatmul.msk.bf16.gmra.mxu3 %vm164_vm1, %v3910_v40  ;;  %3362 = vmatmul.msk.bf16.gmra.mxu0 %vm164_vm1, %v3926_v41 }
  0x66   :  { %3024 = vmatmul.msk.bf16.gmra.mxu1 %vm164_vm1, %v3863_v42  ;;  %3137 = vmatmul.msk.bf16.gmra.mxu2 %vm164_vm1, %v3895_v43 }
  0x69   :  { %3250 = vmatmul.msk.bf16.gmra.mxu3 %vm164_vm1, %v3911_v44  ;;  %3363 = vmatmul.msk.bf16.gmra.mxu0 %vm164_vm1, %v3927_v45 }
  0x76   :  { %3025 = vmatmul.msk.bf16.gmra.mxu1 %vm164_vm1, %v3864_v46  ;;  %3138 = vmatmul.msk.bf16.gmra.mxu2 %vm164_vm1, %v3896_v47 }
  0x79   :  { %3251 = vmatmul.msk.bf16.gmra.mxu3 %vm164_vm1, %v3912_v48  ;;  %3364 = vmatmul.msk.bf16.gmra.mxu0 %vm164_vm1, %v3928_v49 }
  0x83   :  { %v4296_v52 = vpop.f32.mrf.mxu1 }
  0x86   :  { %v4304_v55 = vpop.f32.mrf.mxu0  ;;  %3026 = vmatmul.msk.bf16.gmra.mxu1 %vm164_vm1, %v3865_v50  ;;  %3139 = vmatmul.msk.bf16.gmra.mxu2 %vm164_vm1, %v3897_v51 }
  0x89   :  { %3252 = vmatmul.msk.bf16.gmra.mxu3 %vm164_vm1, %v3913_v53  ;;  %3365 = vmatmul.msk.bf16.gmra.mxu0 %vm164_vm1, %v3929_v54  ;;  %v4310_v56 = vpop.f32.mrf.mxu2  ;;  %v3870_v53 = vld [vmem:[%s5106_s0 + $0x48] sm:$0xff] }
  0x8a   :  { %v3902_v54 = vld [vmem:[%s5106_s0 + $0x68] sm:$0xff] }
  0x8b   :  { %v4314_v58 = vpop.f32.mrf.mxu1 }
  0x8c   :  { %v4312_v57 = vpop.f32.mrf.mxu3 }
  0x8e   :  { %v4316_v59 = vpop.f32.mrf.mxu0 }
  0x91   :  { %v4318_v60 = vpop.f32.mrf.mxu2 }
  0x93   :  { %v4328_v0 = vpop.f32.mrf.mxu1 }
  0x94   :  { %v4320_v61 = vpop.f32.mrf.mxu3 }
  0x96   :  { %v4336_v3 = vpop.f32.mrf.mxu0  ;;  %3027 = vmatmul.msk.bf16.gmra.mxu1 %vm164_vm1, %v3866_v62  ;;  %3140 = vmatmul.msk.bf16.gmra.mxu2 %vm164_vm1, %v3898_v63  ;;  %v3918_v62 = vld [vmem:[%s5106_s0 + $0x78] sm:$0xff] }
  0x99   :  { %3253 = vmatmul.msk.bf16.gmra.mxu3 %vm164_vm1, %v3914_v1  ;;  %3366 = vmatmul.msk.bf16.gmra.mxu0 %vm164_vm1, %v3930_v2  ;;  %v4342_v4 = vpop.f32.mrf.mxu2 }
  0x9b   :  { %v4346_v6 = vpop.f32.mrf.mxu1 }
  0x9c   :  { %v4344_v5 = vpop.f32.mrf.mxu3 }
  0x9e   :  { %v4348_v7 = vpop.f32.mrf.mxu0 }
  0xa1   :  { %v4350_v8 = vpop.f32.mrf.mxu2 }
  0xa3   :  { %v4360_v12 = vpop.f32.mrf.mxu1 }
  0xa4   :  { %v4352_v9 = vpop.f32.mrf.mxu3 }
  0xa6   :  { %v4368_v15 = vpop.f32.mrf.mxu0  ;;  %3028 = vmatmul.msk.bf16.gmra.mxu1 %vm164_vm1, %v3867_v10  ;;  %3141 = vmatmul.msk.bf16.gmra.mxu2 %vm164_vm1, %v3899_v11 }
  0xa9   :  { %3254 = vmatmul.msk.bf16.gmra.mxu3 %vm164_vm1, %v3915_v13  ;;  %3367 = vmatmul.msk.bf16.gmra.mxu0 %vm164_vm1, %v3931_v14  ;;  %v4374_v16 = vpop.f32.mrf.mxu2 }
  0xab   :  { %v4378_v18 = vpop.f32.mrf.mxu1 }
  0xac   :  { %v4376_v17 = vpop.f32.mrf.mxu3 }
  0xae   :  { %v4380_v19 = vpop.f32.mrf.mxu0 }
  0xb1   :  { %v4382_v20 = vpop.f32.mrf.mxu2 }
  0xb3   :  { %v4392_v24 = vpop.f32.mrf.mxu1 }
  0xb4   :  { %v4384_v21 = vpop.f32.mrf.mxu3 }
  0xb6   :  { %v4400_v27 = vpop.f32.mrf.mxu0  ;;  %3029 = vmatmul.msk.bf16.gmra.mxu1 %vm164_vm1, %v3868_v22  ;;  %3142 = vmatmul.msk.bf16.gmra.mxu2 %vm164_vm1, %v3900_v23 }
  0xb9   :  { %3255 = vmatmul.msk.bf16.gmra.mxu3 %vm164_vm1, %v3916_v25  ;;  %3368 = vmatmul.msk.bf16.gmra.mxu0 %vm164_vm1, %v3932_v26  ;;  %v4406_v28 = vpop.f32.mrf.mxu2 }
  0xbb   :  { %v4410_v30 = vpop.f32.mrf.mxu1 }
  0xbc   :  { %v4408_v29 = vpop.f32.mrf.mxu3 }
  0xbe   :  { %v4412_v31 = vpop.f32.mrf.mxu0 }
  0xc1   :  { %v4414_v32 = vpop.f32.mrf.mxu2 }
  0xc3   :  { %v446_v36 = vpop.f32.mrf.mxu1 }
  0xc4   :  { %v4416_v33 = vpop.f32.mrf.mxu3  ;;  %v447_v39 = vadd.f32 %v446_v36, %v4304_v55 }
  0xc6   :  { %v1275_v40 = vpop.f32.mrf.mxu0  ;;  %3030 = vmatmul.msk.bf16.gmra.mxu1 %vm164_vm1, %v3869_v34  ;;  %3143 = vmatmul.msk.bf16.gmra.mxu2 %vm164_vm1, %v3901_v35 }
  0xc9   :  { %3256 = vmatmul.msk.bf16.gmra.mxu3 %vm164_vm1, %v3917_v37  ;;  %3369 = vmatmul.msk.bf16.gmra.mxu0 %vm164_vm1, %v3933_v38  ;;  %v701_v41 = vpop.f32.mrf.mxu2  ;;  %v3871_v37 = vld [vmem:[%s5106_s0 + $0x50] sm:$0xff] }
  0xca   :  { %v781_v42 = vadd.f32 %v701_v41, %v447_v39  ;;  %v3903_v38 = vld [vmem:[%s5106_s0 + $0x70] sm:$0xff] }
  0xcb   :  { %v448_v44 = vpop.f32.mrf.mxu1 }
  0xcc   :  { %v988_v43 = vpop.f32.mrf.mxu3  ;;  %v449_v46 = vadd.f32 %v448_v44, %v4316_v59  ;;  %v3934_v59 = vld [vmem:[%s5106_s0 + $0x88] sm:$0xff] }
  0xcd   :  { %v1068_v45 = vadd.f32 %v988_v43, %v781_v42 }
  0xce   :  { %v1277_v47 = vpop.f32.mrf.mxu0 }
  0xcf   :  { %v4436_v48 = vadd.f32 %v1275_v40, %v1068_v45  ;;  %v3919_v40 = vld [vmem:[%s5106_s0 + $0x80] sm:$0xff] }
  0xd1   :  { %v703_v49 = vpop.f32.mrf.mxu2 }
  0xd2   :  { %v782_v50 = vadd.f32 %v703_v49, %v449_v46 }
  0xd3   :  { %v451_v55 = vpop.f32.mrf.mxu1 }
  0xd4   :  { %v990_v51 = vpop.f32.mrf.mxu3  ;;  %v452_v1 = vadd.f32 %v451_v55, %v4336_v3 }
  0xd5   :  { %v1069_v63 = vadd.f32 %v990_v51, %v782_v50 }
  0xd6   :  { %v1280_v2 = vpop.f32.mrf.mxu0  ;;  %3031 = vmatmul.msk.bf16.gmra.mxu1 %vm164_vm1, %v3870_v53  ;;  %3144 = vmatmul.msk.bf16.gmra.mxu2 %vm164_vm1, %v3902_v54 }
  0xd7   :  { %v4453_v10 = vadd.f32 %v1277_v47, %v1069_v63  ;;  %v3904_v63 = vld [vmem:[%s5106_s0 + $0x78] sm:$0xff] }
  0xd9   :  { %3257 = vmatmul.msk.bf16.gmra.mxu3 %vm164_vm1, %v3918_v62  ;;  %3370 = vmatmul.msk.bf16.gmra.mxu0 %vm164_vm1, %v3934_v59  ;;  %v706_v11 = vpop.f32.mrf.mxu2  ;;  %v3872_v59 = vld [vmem:[%s5106_s0 + $0x58] sm:$0xff] }
  0xda   :  { %v783_v13 = vadd.f32 %v706_v11, %v452_v1 }
  0xdb   :  { %v453_v22 = vpop.f32.mrf.mxu1 }
  0xdc   :  { %v993_v14 = vpop.f32.mrf.mxu3  ;;  %v454_v25 = vadd.f32 %v453_v22, %v4348_v7  ;;  %v3935_v7 = vld [vmem:[%s5106_s0 + $0x90] sm:$0xff] }
  0xdd   :  { %v1070_v23 = vadd.f32 %v993_v14, %v783_v13 }
  0xde   :  { %v1282_v26 = vpop.f32.mrf.mxu0 }
  0xdf   :  { %v4458_v3 = vadd.f32 %v1280_v2, %v1070_v23  ;;  %v3920_v2 = vld [vmem:[%s5106_s0 + $0x88] sm:$0xff] }
  0xe1   :  { %v708_v34 = vpop.f32.mrf.mxu2 }
  0xe2   :  { %v784_v35 = vadd.f32 %v708_v34, %v454_v25 }
  0xe3   :  { %v456_v39 = vpop.f32.mrf.mxu1 }
  0xe4   :  { %v995_v36 = vpop.f32.mrf.mxu3  ;;  %v457_v42 = vadd.f32 %v456_v39, %v4368_v15 }
  0xe5   :  { %v1071_v41 = vadd.f32 %v995_v36, %v784_v35 }
  0xe6   :  { %v1285_v43 = vpop.f32.mrf.mxu0  ;;  %3032 = vmatmul.msk.bf16.gmra.mxu1 %vm164_vm1, %v3871_v37  ;;  %3145 = vmatmul.msk.bf16.gmra.mxu2 %vm164_vm1, %v3903_v38 }
  0xe7   :  { %v4475_v44 = vadd.f32 %v1282_v26, %v1071_v41  ;;  %v3905_v41 = vld [vmem:[%s5106_s0 + $0x80] sm:$0xff] }
  0xe9   :  { %3258 = vmatmul.msk.bf16.gmra.mxu3 %vm164_vm1, %v3919_v40  ;;  %3371 = vmatmul.msk.bf16.gmra.mxu0 %vm164_vm1, %v3935_v7  ;;  %v711_v45 = vpop.f32.mrf.mxu2  ;;  %v3873_v7 = vld [vmem:[%s5106_s0 + $0x60] sm:$0xff] }
  0xea   :  { %v785_v46 = vadd.f32 %v711_v45, %v457_v42 }
  0xeb   :  { %v458_v49 = vpop.f32.mrf.mxu1 }
  0xec   :  { %v998_v47 = vpop.f32.mrf.mxu3  ;;  %v459_v51 = vadd.f32 %v458_v49, %v4380_v19  ;;  %v3936_v19 = vld [vmem:[%s5106_s0 + $0x98] sm:$0xff] }
  0xed   :  { %v1072_v50 = vadd.f32 %v998_v47, %v785_v46 }
  0xee   :  { %v1287_v53 = vpop.f32.mrf.mxu0 }
  0xef   :  { %v4480_v15 = vadd.f32 %v1285_v43, %v1072_v50  ;;  %v3921_v43 = vld [vmem:[%s5106_s0 + $0x90] sm:$0xff] }
  0xf1   :  { %v713_v54 = vpop.f32.mrf.mxu2 }
  0xf2   :  { %v786_v55 = vadd.f32 %v713_v54, %v459_v51 }
  0xf3   :  { %v461_v1 = vpop.f32.mrf.mxu1 }
  0xf4   :  { %v1000_v62 = vpop.f32.mrf.mxu3  ;;  %v462_v13 = vadd.f32 %v461_v1, %v4400_v27 }
  0xf5   :  { %v1073_v11 = vadd.f32 %v1000_v62, %v786_v55 }
  0xf6   :  { %v1290_v14 = vpop.f32.mrf.mxu0  ;;  %3033 = vmatmul.msk.bf16.gmra.mxu1 %vm164_vm1, %v3872_v59  ;;  %3146 = vmatmul.msk.bf16.gmra.mxu2 %vm164_vm1, %v3904_v63 }
  0xf7   :  { %v4497_v22 = vadd.f32 %v1287_v53, %v1073_v11  ;;  %v3874_v11 = vld [vmem:[%s5106_s0 + $0x68] sm:$0xff] }
  0xf9   :  { %3259 = vmatmul.msk.bf16.gmra.mxu3 %vm164_vm1, %v3920_v2  ;;  %3372 = vmatmul.msk.bf16.gmra.mxu0 %vm164_vm1, %v3936_v19  ;;  %v716_v23 = vpop.f32.mrf.mxu2 }
  0xfa   :  { %v787_v25 = vadd.f32 %v716_v23, %v462_v13 }
  0xfb   :  { %v463_v34 = vpop.f32.mrf.mxu1 }
  0xfc   :  { %v1003_v26 = vpop.f32.mrf.mxu3  ;;  %v464_v36 = vadd.f32 %v463_v34, %v4412_v31  ;;  %v3937_v31 = vld [vmem:[%s5106_s0 + $0xa0] sm:$0xff] }
  0xfd   :  { %v1074_v35 = vadd.f32 %v1003_v26, %v787_v25 }
  0xfe   :  { %v1292_v37 = vpop.f32.mrf.mxu0 }
  0xff   :  { %v4502_v27 = vadd.f32 %v1290_v14, %v1074_v35  ;;  %v3922_v14 = vld [vmem:[%s5106_s0 + $0x98] sm:$0xff] }
 0x101   :  { %v718_v38 = vpop.f32.mrf.mxu2 }
 0x102   :  { %v788_v39 = vadd.f32 %v718_v38, %v464_v36 }
 0x103   :  { %v466_v42 = vpop.f32.mrf.mxu1 }
 0x104   :  { %v1005_v40 = vpop.f32.mrf.mxu3  ;;  %v467_v49 = vadd.f32 %v466_v42, %v4296_v52  ;;  %v3906_v52 = vld [vmem:[%s5106_s0 + $0x88] sm:$0xff] }
 0x105   :  { %v1075_v45 = vadd.f32 %v1005_v40, %v788_v39 }
 0x106   :  { %v1295_v46 = vpop.f32.mrf.mxu0  ;;  %3034 = vmatmul.msk.bf16.gmra.mxu1 %vm164_vm1, %v3873_v7  ;;  %3147 = vmatmul.msk.bf16.gmra.mxu2 %vm164_vm1, %v3905_v41 }
 0x107   :  { %v4518_v47 = vadd.f32 %v1292_v37, %v1075_v45  ;;  %v3875_v45 = vld [vmem:[%s5106_s0 + $0x70] sm:$0xff] }
 0x109   :  { %3260 = vmatmul.msk.bf16.gmra.mxu3 %vm164_vm1, %v3921_v43  ;;  %3373 = vmatmul.msk.bf16.gmra.mxu0 %vm164_vm1, %v3937_v31  ;;  %v721_v50 = vpop.f32.mrf.mxu2 }
 0x10a   :  { %v789_v51 = vadd.f32 %v721_v50, %v467_v49  ;;  %v3923_v49 = vld [vmem:[%s5106_s0 + $0xa0] sm:$0xff] }
 0x10b   :  { %v468_v54 = vpop.f32.mrf.mxu1 }
 0x10c   :  { %v1008_v53 = vpop.f32.mrf.mxu3  ;;  %v469_v63 = vadd.f32 %v468_v54, %v4314_v58  ;;  %v3938_v58 = vld [vmem:[%s5106_s0 + $0xa8] sm:$0xff] }
 0x10d   :  { %v1076_v55 = vadd.f32 %v1008_v53, %v789_v51 }
 0x10e   :  { %v1297_v62 = vpop.f32.mrf.mxu0 }
 0x10f   :  { %v4523_v59 = vadd.f32 %v1295_v46, %v1076_v55 }
 0x111   :  { %v723_v1 = vpop.f32.mrf.mxu2 }
 0x112   :  { %v790_v2 = vadd.f32 %v723_v1, %v469_v63 }
 0x113   :  { %v471_v13 = vpop.f32.mrf.mxu1 }
 0x114   :  { %v1010_v19 = vpop.f32.mrf.mxu3  ;;  %v472_v34 = vadd.f32 %v471_v13, %v4328_v0  ;;  %v3907_v0 = vld [vmem:[%s5106_s0 + $0x90] sm:$0xff] }
 0x115   :  { %v1077_v23 = vadd.f32 %v1010_v19, %v790_v2 }
 0x116   :  { %v1300_v25 = vpop.f32.mrf.mxu0  ;;  %3035 = vmatmul.msk.bf16.gmra.mxu1 %vm164_vm1, %v3874_v11  ;;  %3148 = vmatmul.msk.bf16.gmra.mxu2 %vm164_vm1, %v3906_v52 }
 0x117   :  { %v4540_v26 = vadd.f32 %v1297_v62, %v1077_v23  ;;  %v3876_v23 = vld [vmem:[%s5106_s0 + $0x78] sm:$0xff] }
 0x119   :  { %3261 = vmatmul.msk.bf16.gmra.mxu3 %vm164_vm1, %v3922_v14  ;;  %3374 = vmatmul.msk.bf16.gmra.mxu0 %vm164_vm1, %v3938_v58  ;;  %v726_v35 = vpop.f32.mrf.mxu2 }
 0x11a   :  { %v791_v36 = vadd.f32 %v726_v35, %v472_v34  ;;  %v3924_v34 = vld [vmem:[%s5106_s0 + $0xa8] sm:$0xff] }
 0x11b   :  { %v473_v38 = vpop.f32.mrf.mxu1 }
 0x11c   :  { %v1013_v37 = vpop.f32.mrf.mxu3  ;;  %v474_v41 = vadd.f32 %v473_v38, %v4346_v6  ;;  %v3939_v6 = vld [vmem:[%s5106_s0 + $0xb0] sm:$0xff] }
 0x11d   :  { %v1078_v39 = vadd.f32 %v1013_v37, %v791_v36 }
 0x11e   :  { %v1302_v40 = vpop.f32.mrf.mxu0 }
 0x11f   :  { %v4545_v7 = vadd.f32 %v1300_v25, %v1078_v39 }
 0x121   :  { %v728_v42 = vpop.f32.mrf.mxu2 }
 0x122   :  { %v792_v43 = vadd.f32 %v728_v42, %v474_v41 }
 0x123   :  { %v476_v46 = vpop.f32.mrf.mxu1 }
 0x124   :  { %v1015_v31 = vpop.f32.mrf.mxu3  ;;  %v477_v54 = vadd.f32 %v476_v46, %v4360_v12  ;;  %v3908_v12 = vld [vmem:[%s5106_s0 + $0x98] sm:$0xff] }
 0x125   :  { %v1079_v50 = vadd.f32 %v1015_v31, %v792_v43 }
 0x126   :  { %v1305_v51 = vpop.f32.mrf.mxu0  ;;  %3036 = vmatmul.msk.bf16.gmra.mxu1 %vm164_vm1, %v3875_v45  ;;  %3149 = vmatmul.msk.bf16.gmra.mxu2 %vm164_vm1, %v3907_v0 }
 0x127   :  { %v4562_v53 = vadd.f32 %v1302_v40, %v1079_v50  ;;  %v3941_v50 = vld [vmem:[%s5106_s0 + $0x50] sm:$0xff] }
 0x129   :  { %3262 = vmatmul.msk.bf16.gmra.mxu3 %vm164_vm1, %v3923_v49  ;;  %3375 = vmatmul.msk.bf16.gmra.mxu0 %vm164_vm1, %v3939_v6  ;;  %v731_v55 = vpop.f32.mrf.mxu2 }
 0x12a   :  { %v793_v62 = vadd.f32 %v731_v55, %v477_v54  ;;  %v3973_v54 = vld [vmem:[%s5106_s0 + $0x70] sm:$0xff] }
 0x12b   :  { %v478_v1 = vpop.f32.mrf.mxu1 }
 0x12c   :  { %v1018_v63 = vpop.f32.mrf.mxu3  ;;  %v479_v52 = vadd.f32 %v478_v1, %v4378_v18  ;;  %v3940_v18 = vld [vmem:[%s5106_s0 + $0xb8] sm:$0xff] }
 0x12d   :  { %v1080_v2 = vadd.f32 %v1018_v63, %v793_v62 }
 0x12e   :  { %v1307_v19 = vpop.f32.mrf.mxu0 }
 0x12f   :  { %v4567_v11 = vadd.f32 %v1305_v51, %v1080_v2 }
 0x131   :  { %v733_v13 = vpop.f32.mrf.mxu2 }
 0x132   :  { %v794_v14 = vadd.f32 %v733_v13, %v479_v52 }
 0x133   :  { %v481_v25 = vpop.f32.mrf.mxu1 }
 0x134   :  { %v1020_v58 = vpop.f32.mrf.mxu3  ;;  %v482_v38 = vadd.f32 %v481_v25, %v4392_v24  ;;  %v3957_v24 = vld [vmem:[%s5106_s0 + $0x60] sm:$0xff] }
 0x135   :  { %v1081_v35 = vadd.f32 %v1020_v58, %v794_v14 }
 0x136   :  { %v1310_v36 = vpop.f32.mrf.mxu0  ;;  %3037 = vmatmul.msk.bf16.gmra.mxu1 %vm164_vm1, %v3876_v23  ;;  %3150 = vmatmul.msk.bf16.gmra.mxu2 %vm164_vm1, %v3908_v12 }
 0x137   :  { %v4584_v37 = vadd.f32 %v1307_v19, %v1081_v35  ;;  %v3942_v35 = vld [vmem:[%s5106_s0 + $0x58] sm:$0xff] }
 0x139   :  { %3263 = vmatmul.msk.bf16.gmra.mxu3 %vm164_vm1, %v3924_v34  ;;  %3376 = vmatmul.msk.bf16.gmra.mxu0 %vm164_vm1, %v3940_v18  ;;  %v736_v39 = vpop.f32.mrf.mxu2 }
 0x13a   :  { %v795_v40 = vadd.f32 %v736_v39, %v482_v38  ;;  %v3974_v38 = vld [vmem:[%s5106_s0 + $0x78] sm:$0xff] }
 0x13b   :  { %v483_v42 = vpop.f32.mrf.mxu1 }
 0x13c   :  { %v1023_v41 = vpop.f32.mrf.mxu3  ;;  %v484_v0 = vadd.f32 %v483_v42, %v4410_v30  ;;  %v3989_v30 = vld [vmem:[%s5106_s0 + $0x80] sm:$0xff] }
 0x13d   :  { %v1082_v43 = vadd.f32 %v1023_v41, %v795_v40 }
 0x13e   :  { %v1312_v31 = vpop.f32.mrf.mxu0 }
 0x13f   :  { %v4589_v45 = vadd.f32 %v1310_v36, %v1082_v43 }
 0x141   :  { %v738_v46 = vpop.f32.mrf.mxu2 }
 0x142   :  { %v796_v49 = vadd.f32 %v738_v46, %v484_v0 }
 0x143   :  { %v486_v51 = vpop.f32.mrf.mxu1 }
 0x144   :  { %v1025_v6 = vpop.f32.mrf.mxu3  ;;  %v487_v1 = vadd.f32 %v486_v51, %v4310_v56  ;;  %v3958_v56 = vld [vmem:[%s5106_s0 + $0x68] sm:$0xff] }
 0x145   :  { %v1083_v55 = vadd.f32 %v1025_v6, %v796_v49 }
 0x146   :  { %v1315_v62 = vpop.f32.mrf.mxu0  ;;  %3474 = vmatmul.msk.bf16.vlgmr.msra.gmra.mxu1 %vm164_vm1, %v3941_v50  ;;  %3587 = vmatmul.msk.bf16.vlgmr.msra.gmra.mxu2 %vm164_vm1, %v3957_v24 }
 0x147   :  { %v4606_v63 = vadd.f32 %v1312_v31, %v1083_v55  ;;  %v3943_v55 = vld [vmem:[%s5106_s0 + $0x60] sm:$0xff] }
 0x149   :  { %3700 = vmatmul.msk.bf16.vlgmr.msra.gmra.mxu3 %vm164_vm1, %v3973_v54  ;;  %3813 = vmatmul.msk.bf16.vlgmr.msra.gmra.mxu0 %vm164_vm1, %v3989_v30  ;;  %v741_v2 = vpop.f32.mrf.mxu2 }
 0x14a   :  { %v797_v19 = vadd.f32 %v741_v2, %v487_v1  ;;  %v3975_v1 = vld [vmem:[%s5106_s0 + $0x80] sm:$0xff] }
 0x14b   :  { %v488_v13 = vpop.f32.mrf.mxu1 }
 0x14c   :  { %v1028_v52 = vpop.f32.mrf.mxu3  ;;  %v489_v12 = vadd.f32 %v488_v13, %v4318_v60  ;;  %v3990_v60 = vld [vmem:[%s5106_s0 + $0x88] sm:$0xff] }
 0x14d   :  { %v1084_v14 = vadd.f32 %v1028_v52, %v797_v19 }
 0x14e   :  { %v1317_v58 = vpop.f32.mrf.mxu0 }
 0x14f   :  { %v4611_v23 = vadd.f32 %v1315_v62, %v1084_v14 }
 0x151   :  { %v743_v25 = vpop.f32.mrf.mxu2 }
 0x152   :  { %v798_v34 = vadd.f32 %v743_v25, %v489_v12 }
 0x153   :  { %v491_v36 = vpop.f32.mrf.mxu1 }
 0x154   :  { %v1030_v18 = vpop.f32.mrf.mxu3  ;;  %v492_v42 = vadd.f32 %v491_v36, %v4342_v4  ;;  %v3959_v4 = vld [vmem:[%s5106_s0 + $0x70] sm:$0xff] }
 0x155   :  { %v1085_v39 = vadd.f32 %v1030_v18, %v798_v34 }
 0x156   :  { %v1320_v40 = vpop.f32.mrf.mxu0  ;;  %3475 = vmatmul.msk.bf16.gmra.mxu1 %vm164_vm1, %v3942_v35  ;;  %3588 = vmatmul.msk.bf16.gmra.mxu2 %vm164_vm1, %v3958_v56 }
 0x157   :  { %v4628_v41 = vadd.f32 %v1317_v58, %v1085_v39  ;;  %v3944_v39 = vld [vmem:[%s5106_s0 + $0x68] sm:$0xff] }
 0x159   :  { %3701 = vmatmul.msk.bf16.gmra.mxu3 %vm164_vm1, %v3974_v38  ;;  %3814 = vmatmul.msk.bf16.gmra.mxu0 %vm164_vm1, %v3990_v60  ;;  %v746_v43 = vpop.f32.mrf.mxu2 }
 0x15a   :  { %v799_v31 = vadd.f32 %v746_v43, %v492_v42  ;;  %v3976_v42 = vld [vmem:[%s5106_s0 + $0x88] sm:$0xff] }
 0x15b   :  { %v493_v46 = vpop.f32.mrf.mxu1 }
 0x15c   :  { %v1033_v0 = vpop.f32.mrf.mxu3  ;;  %v494_v24 = vadd.f32 %v493_v46, %v4350_v8  ;;  %v3991_v8 = vld [vmem:[%s5106_s0 + $0x90] sm:$0xff] }
 0x15d   :  { %v1086_v49 = vadd.f32 %v1033_v0, %v799_v31 }
 0x15e   :  { %v1322_v6 = vpop.f32.mrf.mxu0 }
 0x15f   :  { %v4633_v50 = vadd.f32 %v1320_v40, %v1086_v49 }
 0x161   :  { %v748_v51 = vpop.f32.mrf.mxu2 }
 0x162   :  { %v800_v54 = vadd.f32 %v748_v51, %v494_v24 }
 0x163   :  { %v496_v62 = vpop.f32.mrf.mxu1 }
 0x164   :  { %v1035_v30 = vpop.f32.mrf.mxu3  ;;  %v497_v13 = vadd.f32 %v496_v62, %v4374_v16  ;;  %v3960_v16 = vld [vmem:[%s5106_s0 + $0x78] sm:$0xff] }
 0x165   :  { %v1087_v2 = vadd.f32 %v1035_v30, %v800_v54 }
 0x166   :  { %v1325_v19 = vpop.f32.mrf.mxu0  ;;  %3476 = vmatmul.msk.bf16.gmra.mxu1 %vm164_vm1, %v3943_v55  ;;  %3589 = vmatmul.msk.bf16.gmra.mxu2 %vm164_vm1, %v3959_v4 }
 0x167   :  { %v4650_v52 = vadd.f32 %v1322_v6, %v1087_v2  ;;  %v3945_v2 = vld [vmem:[%s5106_s0 + $0x70] sm:$0xff] }
 0x169   :  { %3702 = vmatmul.msk.bf16.gmra.mxu3 %vm164_vm1, %v3975_v1  ;;  %3815 = vmatmul.msk.bf16.gmra.mxu0 %vm164_vm1, %v3991_v8  ;;  %v751_v14 = vpop.f32.mrf.mxu2 }
 0x16a   :  { %v801_v58 = vadd.f32 %v751_v14, %v497_v13  ;;  %v3977_v13 = vld [vmem:[%s5106_s0 + $0x90] sm:$0xff] }
 0x16b   :  { %v498_v25 = vpop.f32.mrf.mxu1 }
 0x16c   :  { %v1038_v12 = vpop.f32.mrf.mxu3  ;;  %v499_v56 = vadd.f32 %v498_v25, %v4382_v20  ;;  %v3992_v20 = vld [vmem:[%s5106_s0 + $0x98] sm:$0xff] }
 0x16d   :  { %v1088_v34 = vadd.f32 %v1038_v12, %v801_v58 }
 0x16e   :  { %v1327_v18 = vpop.f32.mrf.mxu0 }
 0x16f   :  { %v4655_v35 = vadd.f32 %v1325_v19, %v1088_v34 }
 0x171   :  { %v753_v36 = vpop.f32.mrf.mxu2 }
 0x172   :  { %v802_v38 = vadd.f32 %v753_v36, %v499_v56 }
 0x173   :  { %v501_v40 = vpop.f32.mrf.mxu1 }
 0x174   :  { %v1040_v60 = vpop.f32.mrf.mxu3  ;;  %v502_v46 = vadd.f32 %v501_v40, %v4406_v28  ;;  %v3961_v28 = vld [vmem:[%s5106_s0 + $0x80] sm:$0xff] }
 0x175   :  { %v1089_v43 = vadd.f32 %v1040_v60, %v802_v38 }
 0x176   :  { %v1330_v31 = vpop.f32.mrf.mxu0  ;;  %3477 = vmatmul.msk.bf16.gmra.mxu1 %vm164_vm1, %v3944_v39  ;;  %3590 = vmatmul.msk.bf16.gmra.mxu2 %vm164_vm1, %v3960_v16 }
 0x177   :  { %v4672_v0 = vadd.f32 %v1327_v18, %v1089_v43  ;;  %v3946_v43 = vld [vmem:[%s5106_s0 + $0x78] sm:$0xff] }
 0x179   :  { %3703 = vmatmul.msk.bf16.gmra.mxu3 %vm164_vm1, %v3976_v42  ;;  %3816 = vmatmul.msk.bf16.gmra.mxu0 %vm164_vm1, %v3992_v20  ;;  %v756_v49 = vpop.f32.mrf.mxu2 }
 0x17a   :  { %v803_v6 = vadd.f32 %v756_v49, %v502_v46  ;;  %v3978_v46 = vld [vmem:[%s5106_s0 + $0x98] sm:$0xff] }
 0x17b   :  { %v503_v51 = vpop.f32.mrf.mxu1 }
 0x17c   :  { %v1043_v24 = vpop.f32.mrf.mxu3  ;;  %v504_v4 = vadd.f32 %v503_v51, %v4414_v32  ;;  %v3993_v32 = vld [vmem:[%s5106_s0 + $0xa0] sm:$0xff] }
 0x17d   :  { %v1090_v54 = vadd.f32 %v1043_v24, %v803_v6 }
 0x17e   :  { %v1332_v30 = vpop.f32.mrf.mxu0 }
 0x17f   :  { %v4677_v55 = vadd.f32 %v1330_v31, %v1090_v54 }
 0x181   :  { %v758_v62 = vpop.f32.mrf.mxu2 }
 0x182   :  { %v804_v1 = vadd.f32 %v758_v62, %v504_v4 }
 0x183   :  { %v506_v19 = vpop.f32.mrf.mxu1 }
 0x184   :  { %v1045_v8 = vpop.f32.mrf.mxu3  ;;  %v507_v25 = vadd.f32 %v506_v19, %v4312_v57  ;;  %v3962_v57 = vld [vmem:[%s5106_s0 + $0x88] sm:$0xff] }
 0x185   :  { %v1091_v14 = vadd.f32 %v1045_v8, %v804_v1 }
 0x186   :  { %v1335_v58 = vpop.f32.mrf.mxu0  ;;  %3478 = vmatmul.msk.bf16.gmra.mxu1 %vm164_vm1, %v3945_v2  ;;  %3591 = vmatmul.msk.bf16.gmra.mxu2 %vm164_vm1, %v3961_v28 }
 0x187   :  { %v4694_v12 = vadd.f32 %v1332_v30, %v1091_v14  ;;  %v3947_v14 = vld [vmem:[%s5106_s0 + $0x80] sm:$0xff] }
 0x189   :  { %3704 = vmatmul.msk.bf16.gmra.mxu3 %vm164_vm1, %v3977_v13  ;;  %3817 = vmatmul.msk.bf16.gmra.mxu0 %vm164_vm1, %v3993_v32  ;;  %v761_v34 = vpop.f32.mrf.mxu2 }
 0x18a   :  { %v805_v18 = vadd.f32 %v761_v34, %v507_v25  ;;  %v3979_v25 = vld [vmem:[%s5106_s0 + $0xa0] sm:$0xff] }
 0x18b   :  { %v508_v36 = vpop.f32.mrf.mxu1 }
 0x18c   :  { %v1048_v56 = vpop.f32.mrf.mxu3  ;;  %v509_v16 = vadd.f32 %v508_v36, %v4320_v61  ;;  %v3994_v61 = vld [vmem:[%s5106_s0 + $0xa8] sm:$0xff] }
 0x18d   :  { %v1092_v38 = vadd.f32 %v1048_v56, %v805_v18 }
 0x18e   :  { %v1337_v60 = vpop.f32.mrf.mxu0 }
 0x18f   :  { %v4699_v39 = vadd.f32 %v1335_v58, %v1092_v38 }
 0x191   :  { %v763_v40 = vpop.f32.mrf.mxu2 }
 0x192   :  { %v806_v42 = vadd.f32 %v763_v40, %v509_v16 }
 0x193   :  { %v511_v31 = vpop.f32.mrf.mxu1 }
 0x194   :  { %v1050_v20 = vpop.f32.mrf.mxu3  ;;  %v512_v51 = vadd.f32 %v511_v31, %v4344_v5  ;;  %v3963_v5 = vld [vmem:[%s5106_s0 + $0x90] sm:$0xff] }
 0x195   :  { %v1093_v49 = vadd.f32 %v1050_v20, %v806_v42 }
 0x196   :  { %v1340_v6 = vpop.f32.mrf.mxu0  ;;  %3479 = vmatmul.msk.bf16.gmra.mxu1 %vm164_vm1, %v3946_v43  ;;  %3592 = vmatmul.msk.bf16.gmra.mxu2 %vm164_vm1, %v3962_v57 }
 0x197   :  { %v4716_v24 = vadd.f32 %v1337_v60, %v1093_v49  ;;  %v3948_v49 = vld [vmem:[%s5106_s0 + $0x88] sm:$0xff] }
 0x199   :  { %3705 = vmatmul.msk.bf16.gmra.mxu3 %vm164_vm1, %v3978_v46  ;;  %3818 = vmatmul.msk.bf16.gmra.mxu0 %vm164_vm1, %v3994_v61  ;;  %v766_v54 = vpop.f32.mrf.mxu2 }
 0x19a   :  { %v807_v30 = vadd.f32 %v766_v54, %v512_v51  ;;  %v3980_v51 = vld [vmem:[%s5106_s0 + $0xa8] sm:$0xff] }
 0x19b   :  { %v513_v62 = vpop.f32.mrf.mxu1 }
 0x19c   :  { %v1053_v4 = vpop.f32.mrf.mxu3  ;;  %v514_v28 = vadd.f32 %v513_v62, %v4352_v9  ;;  %v3995_v9 = vld [vmem:[%s5106_s0 + $0xb0] sm:$0xff] }
 0x19d   :  { %v1094_v1 = vadd.f32 %v1053_v4, %v807_v30 }
 0x19e   :  { %v1342_v8 = vpop.f32.mrf.mxu0 }
 0x19f   :  { %v4721_v2 = vadd.f32 %v1340_v6, %v1094_v1 }
 0x1a1   :  { %v768_v19 = vpop.f32.mrf.mxu2 }
 0x1a2   :  { %v808_v13 = vadd.f32 %v768_v19, %v514_v28 }
 0x1a3   :  { %v516_v58 = vpop.f32.mrf.mxu1 }
 0x1a4   :  { %v1055_v32 = vpop.f32.mrf.mxu3  ;;  %v517_v36 = vadd.f32 %v516_v58, %v4376_v17  ;;  %v3964_v17 = vld [vmem:[%s5106_s0 + $0x98] sm:$0xff] }
 0x1a5   :  { %v1095_v34 = vadd.f32 %v1055_v32, %v808_v13 }
 0x1a6   :  { %v1345_v18 = vpop.f32.mrf.mxu0  ;;  %3480 = vmatmul.msk.bf16.gmra.mxu1 %vm164_vm1, %v3947_v14  ;;  %3593 = vmatmul.msk.bf16.gmra.mxu2 %vm164_vm1, %v3963_v5 }
 0x1a7   :  { %v4738_v56 = vadd.f32 %v1342_v8, %v1095_v34  ;;  %v3949_v34 = vld [vmem:[%s5106_s0 + $0x90] sm:$0xff] }
 0x1a9   :  { %3706 = vmatmul.msk.bf16.gmra.mxu3 %vm164_vm1, %v3979_v25  ;;  %3819 = vmatmul.msk.bf16.gmra.mxu0 %vm164_vm1, %v3995_v9  ;;  %v771_v38 = vpop.f32.mrf.mxu2 }
 0x1aa   :  { %v809_v60 = vadd.f32 %v771_v38, %v517_v36  ;;  %v3981_v36 = vld [vmem:[%s5106_s0 + $0xb0] sm:$0xff] }
 0x1ab   :  { %v518_v40 = vpop.f32.mrf.mxu1 }
 0x1ac   :  { %v1058_v16 = vpop.f32.mrf.mxu3  ;;  %v519_v57 = vadd.f32 %v518_v40, %v4384_v21  ;;  %v3996_v21 = vld [vmem:[%s5106_s0 + $0xb8] sm:$0xff] }
 0x1ad   :  { %v1096_v42 = vadd.f32 %v1058_v16, %v809_v60 }
 0x1ae   :  { %v1347_v20 = vpop.f32.mrf.mxu0 }
 0x1af   :  { %v4743_v43 = vadd.f32 %v1345_v18, %v1096_v42 }
 0x1b1   :  { %v773_v31 = vpop.f32.mrf.mxu2 }
 0x1b2   :  { %v810_v46 = vadd.f32 %v773_v31, %v519_v57 }
 0x1b3   :  { %v521_v6 = vpop.f32.mrf.mxu1 }
 0x1b4   :  { %v1060_v61 = vpop.f32.mrf.mxu3  ;;  %v522_v62 = vadd.f32 %v521_v6, %v4408_v29  ;;  %v3965_v29 = vld [vmem:[%s5106_s0 + $0xa0] sm:$0xff] }
 0x1b5   :  { %v1097_v54 = vadd.f32 %v1060_v61, %v810_v46 }
 0x1b6   :  { %v1350_v30 = vpop.f32.mrf.mxu0  ;;  %3481 = vmatmul.msk.bf16.gmra.mxu1 %vm164_vm1, %v3948_v49  ;;  %3594 = vmatmul.msk.bf16.gmra.mxu2 %vm164_vm1, %v3964_v17 }
 0x1b7   :  { %v4760_v4 = vadd.f32 %v1347_v20, %v1097_v54  ;;  %v3966_v54 = vld [vmem:[%s5106_s0 + $0xa8] sm:$0xff] }
 0x1b9   :  { %3707 = vmatmul.msk.bf16.gmra.mxu3 %vm164_vm1, %v3980_v51  ;;  %3820 = vmatmul.msk.bf16.gmra.mxu0 %vm164_vm1, %v3996_v21  ;;  %v776_v1 = vpop.f32.mrf.mxu2  ;;  %v3950_v21 = vld [vmem:[%s5106_s0 + $0x98] sm:$0xff] }
 0x1ba   :  { %v811_v8 = vadd.f32 %v776_v1, %v522_v62  ;;  %v3982_v62 = vld [vmem:[%s5106_s0 + $0xb8] sm:$0xff] }
 0x1bb   :  { %v523_v19 = vpop.f32.mrf.mxu1 }
 0x1bc   :  { %v1063_v28 = vpop.f32.mrf.mxu3  ;;  %v524_v5 = vadd.f32 %v523_v19, %v4416_v33  ;;  %v3997_v33 = vld [vmem:[%s5106_s0 + $0xc0] sm:$0xff] }
 0x1bd   :  { %v1098_v13 = vadd.f32 %v1063_v28, %v811_v8 }
 0x1be   :  { %v1352_v32 = vpop.f32.mrf.mxu0 }
 0x1bf   :  { %v4765_v14 = vadd.f32 %v1350_v30, %v1098_v13 }
 0x1c1   :  { %v778_v58 = vpop.f32.mrf.mxu2 }
 0x1c2   :  { %v812_v25 = vadd.f32 %v778_v58, %v524_v5 }
 0x1c3   :  { %v1562_v18 = vpop.f32.mrf.mxu1 }
 0x1c4   :  { %v1065_v9 = vpop.f32.mrf.mxu3  ;;  %v1642_v60 = vadd.f32 %v1562_v18, %v4436_v48 }
 0x1c5   :  { %v1099_v38 = vadd.f32 %v1065_v9, %v812_v25 }
 0x1c6   :  { %v2423_v16 = vpop.f32.mrf.mxu0  ;;  %3482 = vmatmul.msk.bf16.gmra.mxu1 %vm164_vm1, %v3949_v34  ;;  %3595 = vmatmul.msk.bf16.gmra.mxu2 %vm164_vm1, %v3965_v29 }
 0x1c7   :  { %v4783_v40 = vadd.f32 %v1352_v32, %v1099_v38  ;;  %v3951_v38 = vld [vmem:[%s5106_s0 + $0xa0] sm:$0xff] }
 0x1c9   :  { %3708 = vmatmul.msk.bf16.gmra.mxu3 %vm164_vm1, %v3981_v36  ;;  %3821 = vmatmul.msk.bf16.gmra.mxu0 %vm164_vm1, %v3997_v33  ;;  %v1849_v42 = vpop.f32.mrf.mxu2 }
 0x1ca   :  { %v1929_v20 = vadd.f32 %v1849_v42, %v1642_v60  ;;  %v3967_v60 = vld [vmem:[%s5106_s0 + $0xb0] sm:$0xff] }
 0x1cb   :  { %v1564_v31 = vpop.f32.mrf.mxu1  ;;  %v3999_v42 = vld [vmem:[%s5106_s0 + $0xd0] sm:$0xff] }
 0x1cc   :  { %v2136_v57 = vpop.f32.mrf.mxu3  ;;  %v1643_v61 = vadd.f32 %v1564_v31, %v4453_v10  ;;  %v3998_v10 = vld [vmem:[%s5106_s0 + $0xc8] sm:$0xff] }
 0x1cd   :  { %v2216_v46 = vadd.f32 %v2136_v57, %v1929_v20 }
 0x1ce   :  { %v2425_v49 = vpop.f32.mrf.mxu0 }
 0x1cf   :  { %v2503_v48 = vadd.f32 %v2423_v16, %v2216_v46 }
 0x1d1   :  { %v1851_v17 = vpop.f32.mrf.mxu2 }
 0x1d2   :  { %v1930_v6 = vadd.f32 %v1851_v17, %v1643_v61 }
 0x1d3   :  { %v1567_v30 = vpop.f32.mrf.mxu1 }
 0x1d4   :  { %v2138_v51 = vpop.f32.mrf.mxu3  ;;  %v1644_v8 = vadd.f32 %v1567_v30, %v4458_v3  ;;  %v4809_v3 = vld [vmem:[%s5108_s2] ss:$0 sm:$0xff] }
 0x1d5   :  { %v2217_v1 = vadd.f32 %v2138_v51, %v1930_v6  ;;  %v4824_v20 = vadd.f32 %v4809_v3, %v2503_v48 }
 0x1d6   :  { %v2428_v28 = vpop.f32.mrf.mxu0  ;;  %3483 = vmatmul.msk.bf16.gmra.mxu1 %vm164_vm1, %v3950_v21  ;;  %3596 = vmatmul.msk.bf16.gmra.mxu2 %vm164_vm1, %v3966_v54 }
 0x1d7   :  { %v2504_v19 = vadd.f32 %v2425_v49, %v2217_v1  ;;  %v2603_v49 = vmul.f32 1.442695, %v4824_v20  ;;  %vm2571_vm2 = vcmp.gt.f32.partialorder %v4824_v20, 0.0 }
 0x1d9   :  { %3709 = vmatmul.msk.bf16.gmra.mxu3 %vm164_vm1, %v3982_v62  ;;  %3822 = vmatmul.msk.bf16.gmra.mxu0 %vm164_vm1, %v3998_v10  ;;  %v1854_v13 = vpop.f32.mrf.mxu2  ;;  %v4833_v48 = vadd.f32 %v4809_v3, %v2504_v19  ;;  %4012 = vpow2.f32 %v2603_v49  ;;  %v3952_v19 = vld [vmem:[%s5106_s0 + $0xa8] sm:$0xff] }
 0x1da   :  { %v1931_v32 = vadd.f32 %v1854_v13, %v1644_v8 }
 0x1db   :  { %v1569_v58 = vpop.f32.mrf.mxu1  ;;  %v2605_v10 = vmul.f32 1.442695, %v4833_v48  ;;  %vm2572_vm4 = vcmp.gt.f32.partialorder %v4833_v48, 0.0 }
 0x1dc   :  { %v2141_v5 = vpop.f32.mrf.mxu3  ;;  %v1645_v9 = vadd.f32 %v1569_v58, %v4475_v44  ;;  %v3983_v44 = vld [vmem:[%s5106_s0 + $0xc0] sm:$0xff]  ;;  %v3968_v58 = vld [vmem:[%s5106_s0 + $0xb8] sm:$0xff] }
 0x1dd   :  { %v2218_v25 = vadd.f32 %v2141_v5, %v1931_v32  ;;  %4014 = vpow2.f32 %v2605_v10 }
 0x1de   :  { %v2430_v34 = vpop.f32.mrf.mxu0 }
 0x1df   :  { %v2505_v29 = vadd.f32 %v2428_v28, %v2218_v25  ;;  %v4013_v28 = vpop.eup %4012 }
 0x1e1   :  { %v1856_v18 = vpop.f32.mrf.mxu2 }
 0x1e2   :  { %v1932_v36 = vadd.f32 %v1856_v18, %v1645_v9  ;;  %v3984_v9 = vld [vmem:[%s5106_s0 + $0xc8] sm:$0xff] }
 0x1e3   :  { %v1572_v16 = vpop.f32.mrf.mxu1 }
 0x1e4   :  { %v2143_v33 = vpop.f32.mrf.mxu3  ;;  %v1646_v31 = vadd.f32 %v1572_v16, %v4480_v15 }
 0x1e5   :  { %v2219_v57 = vadd.f32 %v2143_v33, %v1932_v36 }
 0x1e6   :  { %v2433_v46 = vpop.f32.mrf.mxu0  ;;  %3484 = vmatmul.msk.bf16.gmra.mxu1 %vm164_vm1, %v3951_v38  ;;  %3597 = vmatmul.msk.bf16.gmra.mxu2 %vm164_vm1, %v3967_v60  ;;  %v3829_v38 = vadd.f32 -1.0, %v4013_v28 }
 0x1e7   :  { %v2506_v61 = vadd.f32 %v2430_v34, %v2219_v57  ;;  %v4000_v34 = vld [vmem:[%s5106_s0 + $0xd8] sm:$0xff] }
 0x1e9   :  { %3710 = vmatmul.msk.bf16.gmra.mxu3 %vm164_vm1, %v3983_v44  ;;  %3823 = vmatmul.msk.bf16.gmra.mxu0 %vm164_vm1, %v3999_v42  ;;  %v1859_v17 = vpop.f32.mrf.mxu2  ;;  %v4015_v44 = vpop.eup %4014  ;;  %v2699_v42 = vmul.f32 1.6732632, %v3829_v38 }
 0x1ea   :  { %v1933_v6 = vadd.f32 %v1859_v17, %v1646_v31  ;;  %v4861_v17 = vadd.f32 %v4809_v3, %v2506_v61 }
 0x1eb   :  { %v1574_v21 = vpop.f32.mrf.mxu1 }
 0x1ec   :  { %v2146_v51 = vpop.f32.mrf.mxu3  ;;  %v1647_v54 = vadd.f32 %v1574_v21, %v4497_v22  ;;  %v4845_v22 = vadd.f32 %v4809_v3, %v2505_v29  ;;  %v2609_v28 = vmul.f32 1.442695, %v4861_v17  ;;  %vm2574_vm8 = vcmp.gt.f32.partialorder %v4861_v17, 0.0 }
 0x1ed   :  { %v2220_v15 = vadd.f32 %v2146_v51, %v1933_v6 }
 0x1ee   :  { %v2435_v30 = vpop.f32.mrf.mxu0  ;;  %v2607_v29 = vmul.f32 1.442695, %v4845_v22  ;;  %vm2573_vm6 = vcmp.gt.f32.partialorder %v4845_v22, 0.0 }
 0x1ef   :  { %v2507_v62 = vadd.f32 %v2433_v46, %v2220_v15 }
 0x1f1   :  { %v2543_v1 = vadd.f32 %v4809_v3, %v2507_v62  ;;  %v1861_v8 = vpop.f32.mrf.mxu2  ;;  %v3830_v62 = vadd.f32 -1.0, %v4015_v44 }
 0x1f2   :  { %v1934_v32 = vadd.f32 %v1861_v8, %v1647_v54 }
 0x1f3   :  { %v2611_v13 = vmul.f32 1.442695, %v2543_v1  ;;  %v1577_v25 = vpop.f32.mrf.mxu1  ;;  %vm2575_vm3 = vcmp.gt.f32.partialorder %v2543_v1, 0.0 }
 0x1f4   :  { %v2148_v5 = vpop.f32.mrf.mxu3  ;;  %v1648_v36 = vadd.f32 %v1577_v25, %v4502_v27 }
 0x1f5   :  { %4016 = vpow2.f32 %v2611_v13  ;;  %v2221_v18 = vadd.f32 %v2148_v5, %v1934_v32 }
 0x1f6   :  { %v2438_v33 = vpop.f32.mrf.mxu0  ;;  %3485 = vmatmul.msk.bf16.gmra.mxu1 %vm164_vm1, %v3952_v19  ;;  %3598 = vmatmul.msk.bf16.gmra.mxu2 %vm164_vm1, %v3968_v58  ;;  %4018 = vpow2.f32 %v2607_v29  ;;  %v2700_v58 = vmul.f32 1.6732632, %v3830_v62  ;;  %v4001_v29 = vld [vmem:[%s5106_s0 + $0xe0] sm:$0xff] }
 0x1f7   :  { %v2508_v60 = vadd.f32 %v2435_v30, %v2221_v18  ;;  %v2731_v30 = vsel %vm2571_vm2, %v4824_v20, %v2699_v42 }
 0x1f8   :  { %v4867_v61 = vmul.f32 1.050701, %v2731_v30 }
 0x1f9   :  { %3711 = vmatmul.msk.bf16.gmra.mxu3 %vm164_vm1, %v3984_v9  ;;  %3824 = vmatmul.msk.bf16.gmra.mxu0 %vm164_vm1, %v4000_v34  ;;  %v2544_v16 = vadd.f32 %v4809_v3, %v2508_v60  ;;  %v1864_v57 = vpop.f32.mrf.mxu2  ;;  %v3985_v60 = vld [vmem:[%s5106_s0 + $0xd0] sm:$0xff] }
 0x1fa   :  { %v1935_v46 = vadd.f32 %v1864_v57, %v1648_v36  ;;  %v3969_v36 = vld [vmem:[%s5106_s0 + $0xc0] sm:$0xff] }
 0x1fb   :  { %v4017_v31 = vpop.eup %4016  ;;  %v2613_v27 = vmul.f32 1.442695, %v2544_v16  ;;  %v1579_v51 = vpop.f32.mrf.mxu1  ;;  %vm2576_vm5 = vcmp.gt.f32.partialorder %v2544_v16, 0.0 }
 0x1fc   :  { %v2151_v49 = vpop.f32.mrf.mxu3  ;;  %v3833_v6 = vadd.f32 -1.0, %v4017_v31  ;;  %v1649_v15 = vadd.f32 %v1579_v51, %v4518_v47  ;;  %v4019_v19 = vpop.eup %4018  ;;  %v2732_v31 = vsel %vm2572_vm4, %v4833_v48, %v2700_v58 }
 0x1fd   :  { %4020 = vpow2.f32 %v2613_v27  ;;  %v2222_v21 = vadd.f32 %v2151_v49, %v1935_v46  ;;  %v3831_v27 = vadd.f32 -1.0, %v4019_v19  ;;  %v4893_v51 = vmul.f32 1.050701, %v2732_v31 }
 0x1fe   :  { %v2440_v54 = vpop.f32.mrf.mxu0  ;;  %v2703_v10 = vmul.f32 1.6732632, %v3833_v6  ;;  %4022 = vpow2.f32 %v2609_v28 }
 0x1ff   :  { %v2509_v8 = vadd.f32 %v2438_v33, %v2222_v21 }
 0x200   :  { %v2735_v13 = vsel %vm2575_vm3, %v2543_v1, %v2703_v10  ;;  %v3953_v1 = vld [vmem:[%s5106_s0 + $0xb0] sm:$0xff] }
 0x201   :  { %v4869_v32 = vmul.f32 1.050701, %v2735_v13  ;;  %v2545_v5 = vadd.f32 %v4809_v3, %v2509_v8  ;;  %v1866_v25 = vpop.f32.mrf.mxu2 }
 0x202   :  { %v1936_v34 = vadd.f32 %v1866_v25, %v1649_v15  ;;  %v2701_v15 = vmul.f32 1.6732632, %v3831_v27 }
 0x203   :  { %v4021_v47 = vpop.eup %4020  ;;  %v2795_v20 = vmax.f32 %v4867_v61, %v4869_v32  ;;  %v2615_v9 = vmul.f32 1.442695, %v2545_v5  ;;  %v1582_v38 = vpop.f32.mrf.mxu1  ;;  %vm2577_vm7 = vcmp.gt.f32.partialorder %v2545_v5, 0.0  ;;  %v4003_v61 = vld [vmem:[%s5106_s0 + $0xf0] sm:$0xff] }
 0x204   :  { %v2153_v18 = vpop.f32.mrf.mxu3  ;;  %v3834_v33 = vadd.f32 -1.0, %v4021_v47  ;;  %v1650_v42 = vadd.f32 %v1582_v38, %v4523_v59  ;;  %v4023_v48 = vpop.eup %4022  ;;  %v2733_v47 = vsel %vm2573_vm6, %v4845_v22, %v2701_v15 }
 0x205   :  { %4024 = vpow2.f32 %v2615_v9  ;;  %v2223_v44 = vadd.f32 %v2153_v18, %v1936_v34  ;;  %v3832_v9 = vadd.f32 -1.0, %v4023_v48 }
 0x206   :  { %v2443_v57 = vpop.f32.mrf.mxu0  ;;  %v2704_v46 = vmul.f32 1.6732632, %v3834_v33  ;;  %3486 = vmatmul.msk.bf16.gmra.mxu1 %vm164_vm1, %v3953_v1  ;;  %3599 = vmatmul.msk.bf16.gmra.mxu2 %vm164_vm1, %v3969_v36  ;;  %v4903_v36 = vmul.f32 1.050701, %v2733_v47 }
 0x207   :  { %v2510_v49 = vadd.f32 %v2440_v54, %v2223_v44 }
 0x208   :  { %v2736_v6 = vsel %vm2576_vm5, %v2544_v16, %v2704_v46 }
 0x209   :  { %3712 = vmatmul.msk.bf16.gmra.mxu3 %vm164_vm1, %v3985_v60  ;;  %3825 = vmatmul.msk.bf16.gmra.mxu0 %vm164_vm1, %v4001_v29  ;;  %v4895_v21 = vmul.f32 1.050701, %v2736_v6  ;;  %v2546_v59 = vadd.f32 %v4809_v3, %v2510_v49  ;;  %v1869_v30 = vpop.f32.mrf.mxu2  ;;  %v2702_v60 = vmul.f32 1.6732632, %v3832_v9  ;;  %v3986_v49 = vld [vmem:[%s5106_s0 + $0xd8] sm:$0xff]  ;;  %v4002_v6 = vld [vmem:[%s5106_s0 + $0xe8] sm:$0xff] }
 0x20a   :  { %v1937_v8 = vadd.f32 %v1869_v30, %v1650_v42 }
 0x20b   :  { %v4025_v62 = vpop.eup %4024  ;;  %v2802_v54 = vmax.f32 %v4893_v51, %v4895_v21  ;;  %v2617_v10 = vmul.f32 1.442695, %v2546_v59  ;;  %v1584_v13 = vpop.f32.mrf.mxu1  ;;  %vm2578_vm9 = vcmp.gt.f32.partialorder %v2546_v59, 0.0 }
 0x20c   :  { %v2156_v16 = vpop.f32.mrf.mxu3  ;;  %v3835_v28 = vadd.f32 -1.0, %v4025_v62  ;;  %v1651_v58 = vadd.f32 %v1584_v13, %v4540_v26  ;;  %v2734_v62 = vsel %vm2574_vm8, %v4861_v17, %v2702_v60 }
 0x20d   :  { %4026 = vpow2.f32 %v2617_v10  ;;  %v2224_v19 = vadd.f32 %v2156_v16, %v1937_v8 }
 0x20e   :  { %v2445_v25 = vpop.f32.mrf.mxu0  ;;  %v2705_v34 = vmul.f32 1.6732632, %v3835_v28  ;;  %v4929_v28 = vmul.f32 1.050701, %v2734_v62 }
 0x20f   :  { %v2511_v18 = vadd.f32 %v2443_v57, %v2224_v19  ;;  %v3954_v57 = vld [vmem:[%s5106_s0 + $0xb8] sm:$0xff] }
 0x210   :  { %v2737_v1 = vsel %vm2577_vm7, %v2545_v5, %v2705_v34  ;;  %v3970_v5 = vld [vmem:[%s5106_s0 + $0xc8] sm:$0xff] }
 0x211   :  { %v4905_v33 = vmul.f32 1.050701, %v2737_v1  ;;  %v2547_v38 = vadd.f32 %v4809_v3, %v2511_v18  ;;  %v1871_v29 = vpop.f32.mrf.mxu2 }
 0x212   :  { %v1938_v31 = vadd.f32 %v1871_v29, %v1651_v58 }
 0x213   :  { %v4027_v44 = vpop.eup %4026  ;;  %v2809_v26 = vmax.f32 %v4903_v36, %v4905_v33  ;;  %v2619_v42 = vmul.f32 1.442695, %v2547_v38  ;;  %v1587_v46 = vpop.f32.mrf.mxu1  ;;  %vm2579_vm10 = vcmp.gt.f32.partialorder %v2547_v38, 0.0  ;;  %v4004_v36 = vld [vmem:[%s5106_s0 + $0xf8] sm:$0xff] }
 0x214   :  { %v2158_v22 = vpop.f32.mrf.mxu3  ;;  %v3836_v27 = vadd.f32 -1.0, %v4027_v44  ;;  %v1652_v15 = vadd.f32 %v1587_v46, %v4545_v7 }
 0x215   :  { %4028 = vpow2.f32 %v2619_v42  ;;  %v2225_v48 = vadd.f32 %v2158_v22, %v1938_v31 }
 0x216   :  { %v2448_v30 = vpop.f32.mrf.mxu0  ;;  %v2706_v10 = vmul.f32 1.6732632, %v3836_v27  ;;  %3487 = vmatmul.msk.bf16.gmra.mxu1 %vm164_vm1, %v3954_v57  ;;  %3600 = vmatmul.msk.bf16.gmra.mxu2 %vm164_vm1, %v3970_v5 }
 0x217   :  { %v2512_v8 = vadd.f32 %v2445_v25, %v2225_v48 }
 0x218   :  { %v2738_v16 = vsel %vm2578_vm9, %v2546_v59, %v2706_v10 }
 0x219   :  { %3713 = vmatmul.msk.bf16.gmra.mxu3 %vm164_vm1, %v3986_v49  ;;  %3826 = vmatmul.msk.bf16.gmra.mxu0 %vm164_vm1, %v4002_v6  ;;  %v4931_v13 = vmul.f32 1.050701, %v2738_v16  ;;  %v2548_v7 = vadd.f32 %v4809_v3, %v2512_v8  ;;  %v1874_v19 = vpop.f32.mrf.mxu2 }
 0x21a   :  { %v1939_v47 = vadd.f32 %v1874_v19, %v1652_v15 }
 0x21b   :  { %v4029_v17 = vpop.eup %4028  ;;  %v2816_v58 = vmax.f32 %v4929_v28, %v4931_v13  ;;  %v2621_v25 = vmul.f32 1.442695, %v2548_v7  ;;  %v1589_v59 = vpop.f32.mrf.mxu1  ;;  %vm2580_vm11 = vcmp.gt.f32.partialorder %v2548_v7, 0.0 }
 0x21c   :  { %v2161_v9 = vpop.f32.mrf.mxu3  ;;  %v3837_v34 = vadd.f32 -1.0, %v4029_v17  ;;  %v1653_v1 = vadd.f32 %v1589_v59, %v4562_v53  ;;  %v3955_v53 = vld [vmem:[%s5106_s0 + $0xc0] sm:$0xff] }
 0x21d   :  { %4030 = vpow2.f32 %v2621_v25  ;;  %v2226_v18 = vadd.f32 %v2161_v9, %v1939_v47 }
 0x21e   :  { %v2450_v60 = vpop.f32.mrf.mxu0  ;;  %v2707_v29 = vmul.f32 1.6732632, %v3837_v34 }
 0x21f   :  { %v2513_v44 = vadd.f32 %v2448_v30, %v2226_v18  ;;  %v3987_v30 = vld [vmem:[%s5106_s0 + $0xe0] sm:$0xff] }
 0x220   :  { %v2739_v42 = vsel %vm2579_vm10, %v2547_v38, %v2707_v29  ;;  %v3971_v38 = vld [vmem:[%s5106_s0 + $0xd0] sm:$0xff] }
 0x221   :  { %v2771_v31 = vmul.f32 1.050701, %v2739_v42  ;;  %v2549_v22 = vadd.f32 %v4809_v3, %v2513_v44  ;;  %v1876_v57 = vpop.f32.mrf.mxu2 }
 0x222   :  { %v1940_v49 = vadd.f32 %v1876_v57, %v1653_v1 }
 0x223   :  { %v4031_v5 = vpop.eup %4030  ;;  %v4941_v27 = vmax.f32 %v2795_v20, %v2771_v31  ;;  %v2623_v46 = vmul.f32 1.442695, %v2549_v22  ;;  %v1592_v15 = vpop.f32.mrf.mxu1  ;;  %vm2581_vm12 = vcmp.gt.f32.partialorder %v2549_v22, 0.0 }
 0x224   :  { %v2163_v6 = vpop.f32.mrf.mxu3  ;;  %v3838_v48 = vadd.f32 -1.0, %v4031_v5  ;;  %v1654_v20 = vadd.f32 %v1592_v15, %v4567_v11 }
 0x225   :  { %4032 = vpow2.f32 %v2623_v46  ;;  %v2227_v32 = vadd.f32 %v2163_v6, %v1940_v49 }
 0x226   :  { %v2453_v62 = vpop.f32.mrf.mxu0  ;;  %v2708_v10 = vmul.f32 1.6732632, %v3838_v48  ;;  %3488 = vmatmul.msk.bf16.gmra.mxu1 %vm164_vm1, %v3955_v53  ;;  %3601 = vmatmul.msk.bf16.gmra.mxu2 %vm164_vm1, %v3971_v38  ;;  %v3988_v48 = vld [vmem:[%s5106_s0 + $0xe8] sm:$0xff] }
 0x227   :  { %v2514_v8 = vadd.f32 %v2450_v60, %v2227_v32 }
 0x228   :  { %v2740_v16 = vsel %vm2580_vm11, %v2548_v7, %v2708_v10 }
 0x229   :  { %3714 = vmatmul.msk.bf16.gmra.mxu3 %vm164_vm1, %v3987_v30  ;;  %3827 = vmatmul.msk.bf16.gmra.mxu0 %vm164_vm1, %v4003_v61  ;;  %v2772_v19 = vmul.f32 1.050701, %v2740_v16  ;;  %v2550_v17 = vadd.f32 %v4809_v3, %v2514_v8  ;;  %v1879_v25 = vpop.f32.mrf.mxu2 }
 0x22a   :  { %v1941_v34 = vadd.f32 %v1879_v25, %v1654_v20 }
 0x22b   :  { %v4033_v47 = vpop.eup %4032  ;;  %v4964_v11 = vmax.f32 %v2802_v54, %v2772_v19  ;;  %v2625_v9 = vmul.f32 1.442695, %v2550_v17  ;;  %v1594_v1 = vpop.f32.mrf.mxu1  ;;  %vm2582_vm13 = vcmp.gt.f32.partialorder %v2550_v17, 0.0 }
 0x22c   :  { %v2166_v59 = vpop.f32.mrf.mxu3  ;;  %v3839_v18 = vadd.f32 -1.0, %v4033_v47  ;;  %v1655_v60 = vadd.f32 %v1594_v1, %v4584_v37  ;;  %v3956_v37 = vld [vmem:[%s5106_s0 + $0xc8] sm:$0xff] }
 0x22d   :  { %4034 = vpow2.f32 %v2625_v9  ;;  %v2228_v7 = vadd.f32 %v2166_v59, %v1941_v34 }
 0x22e   :  { %v2455_v29 = vpop.f32.mrf.mxu0  ;;  %v2709_v44 = vmul.f32 1.6732632, %v3839_v18 }
 0x22f   :  { %v2515_v42 = vadd.f32 %v2453_v62, %v2228_v7 }
 0x230   :  { %v2741_v31 = vsel %vm2581_vm12, %v2549_v22, %v2709_v44  ;;  %v3972_v22 = vld [vmem:[%s5106_s0 + $0xd8] sm:$0xff] }
 0x231   :  { %v2773_v57 = vmul.f32 1.050701, %v2741_v31  ;;  %v2551_v5 = vadd.f32 %v4809_v3, %v2515_v42  ;;  %v1881_v51 = vpop.f32.mrf.mxu2 }
 0x232   :  { %v1942_v49 = vadd.f32 %v1881_v51, %v1655_v60 }
 0x233   :  { %v4035_v21 = vpop.eup %4034  ;;  %v4971_v54 = vmax.f32 %v2809_v26, %v2773_v57  ;;  %v2627_v46 = vmul.f32 1.442695, %v2551_v5  ;;  %v1597_v38 = vpop.f32.mrf.mxu1  ;;  %vm2583_vm14 = vcmp.gt.f32.partialorder %v2551_v5, 0.0 }
 0x234   :  { %v2168_v6 = vpop.f32.mrf.mxu3  ;;  %v3840_v53 = vadd.f32 -1.0, %v4035_v21  ;;  %v1656_v26 = vadd.f32 %v1597_v38, %v4589_v45 }
 0x235   :  { %4036 = vpow2.f32 %v2627_v46  ;;  %v2229_v33 = vadd.f32 %v2168_v6, %v1942_v49 }
 0x236   :  { %v2458_v15 = vpop.f32.mrf.mxu0  ;;  %v2710_v30 = vmul.f32 1.6732632, %v3840_v53  ;;  %3489 = vmatmul.msk.bf16.gmra.mxu1 %vm164_vm1, %v3956_v37  ;;  %3602 = vmatmul.msk.bf16.gmra.mxu2 %vm164_vm1, %v3972_v22 }
 0x237   :  { %v2516_v61 = vadd.f32 %v2455_v29, %v2229_v33 }
 0x238   :  { %v2742_v32 = vsel %vm2582_vm13, %v2550_v17, %v2710_v30 }
 0x239   :  { %3715 = vmatmul.msk.bf16.gmra.mxu3 %vm164_vm1, %v3988_v48  ;;  %3828 = vmatmul.msk.bf16.gmra.mxu0 %vm164_vm1, %v4004_v36  ;;  %v2774_v20 = vmul.f32 1.050701, %v2742_v32  ;;  %v2552_v62 = vadd.f32 %v4809_v3, %v2516_v61  ;;  %v1884_v10 = vpop.f32.mrf.mxu2 }
 0x23a   :  { %v1943_v19 = vadd.f32 %v1884_v10, %v1656_v26 }
 0x23b   :  { %v4037_v8 = vpop.eup %4036  ;;  %v4994_v45 = vmax.f32 %v2816_v58, %v2774_v20  ;;  %v2629_v16 = vmul.f32 1.442695, %v2552_v62  ;;  %v1599_v9 = vpop.f32.mrf.mxu1  ;;  %vm2584_vm15 = vcmp.gt.f32.partialorder %v2552_v62, 0.0 }
 0x23c   :  { %v2171_v25 = vpop.f32.mrf.mxu3  ;;  %v3841_v47 = vadd.f32 -1.0, %v4037_v8  ;;  %v1657_v34 = vadd.f32 %v1599_v9, %v4606_v63 }
 0x23d   :  { %4038 = vpow2.f32 %v2629_v16  ;;  %v2230_v17 = vadd.f32 %v2171_v25, %v1943_v19 }
 0x23e   :  { %v2460_v59 = vpop.f32.mrf.mxu0  ;;  %v2711_v18 = vmul.f32 1.6732632, %v3841_v47 }
 0x23f   :  { %v2517_v1 = vadd.f32 %v2458_v15, %v2230_v17 }
 0x240   :  { %v2743_v7 = vsel %vm2583_vm14, %v2551_v5, %v2711_v18 }
 0x241   :  { %v4997_v60 = vmul.f32 1.050701, %v2743_v7  ;;  %v2553_v28 = vadd.f32 %v4809_v3, %v2517_v1  ;;  %v1886_v13 = vpop.f32.mrf.mxu2 }
 0x242   :  { %v1944_v42 = vadd.f32 %v1886_v13, %v1657_v34 }
 0x243   :  { %v4039_v58 = vpop.eup %4038  ;;  %v2797_v29 = vmax.f32 %v4941_v27, %v4997_v60  ;;  %v2631_v44 = vmul.f32 1.442695, %v2553_v28  ;;  %v1602_v51 = vpop.f32.mrf.mxu1  ;;  %vm2585_vm0 = vcmp.gt.f32.partialorder %v2553_v28, 0.0 }
 0x244   :  { %v2173_v31 = vpop.f32.mrf.mxu3  ;;  %v3842_v57 = vadd.f32 -1.0, %v4039_v58  ;;  %v1658_v21 = vadd.f32 %v1602_v51, %v4611_v23 }
 0x245   :  { %4040 = vpow2.f32 %v2631_v44  ;;  %v2231_v63 = vadd.f32 %v2173_v31, %v1944_v42 }
 0x246   :  { %v2463_v46 = vpop.f32.mrf.mxu0  ;;  %v2712_v5 = vmul.f32 1.6732632, %v3842_v57 }
 0x247   :  { %v2518_v49 = vadd.f32 %v2460_v59, %v2231_v63 }
 0x248   :  { %v2744_v6 = vsel %vm2584_vm15, %v2552_v62, %v2712_v5 }
 0x249   :  { %v5003_v37 = vmul.f32 1.050701, %v2744_v6  ;;  %v2554_v22 = vadd.f32 %v4809_v3, %v2518_v49  ;;  %v1889_v53 = vpop.f32.mrf.mxu2 }
 0x24a   :  { %v1945_v33 = vadd.f32 %v1889_v53, %v1658_v21 }
 0x24b   :  { %v4041_v38 = vpop.eup %4040  ;;  %v2804_v48 = vmax.f32 %v4964_v11, %v5003_v37  ;;  %v2633_v36 = vmul.f32 1.442695, %v2554_v22  ;;  %v1604_v30 = vpop.f32.mrf.mxu1  ;;  %vm2586_vm1 = vcmp.gt.f32.partialorder %v2554_v22, 0.0 }
 0x24c   :  { %v2176_v26 = vpop.f32.mrf.mxu3  ;;  %v3843_v15 = vadd.f32 -1.0, %v4041_v38  ;;  %v1659_v61 = vadd.f32 %v1604_v30, %v4628_v41 }
 0x24d   :  { %4042 = vpow2.f32 %v2633_v36  ;;  %v2232_v23 = vadd.f32 %v2176_v26, %v1945_v33 }
 0x24e   :  { %v2465_v32 = vpop.f32.mrf.mxu0  ;;  %v2713_v20 = vmul.f32 1.6732632, %v3843_v15 }
 0x24f   :  { %v2519_v62 = vadd.f32 %v2463_v46, %v2232_v23 }
 0x250   :  { %v2745_v10 = vsel %vm2585_vm0, %v2553_v28, %v2713_v20 }
 0x251   :  { %v5009_v8 = vmul.f32 1.050701, %v2745_v10  ;;  %v2555_v16 = vadd.f32 %v4809_v3, %v2519_v62  ;;  %v1891_v19 = vpop.f32.mrf.mxu2 }
 0x252   :  { %v1946_v17 = vadd.f32 %v1891_v19, %v1659_v61 }
 0x253   :  { %v4043_v25 = vpop.eup %4042  ;;  %v2811_v47 = vmax.f32 %v4971_v54, %v5009_v8  ;;  %v2635_v9 = vmul.f32 1.442695, %v2555_v16  ;;  %v1607_v18 = vpop.f32.mrf.mxu1  ;;  %vm2587_vm2 = vcmp.gt.f32.partialorder %v2555_v16, 0.0 }
 0x254   :  { %v2178_v34 = vpop.f32.mrf.mxu3  ;;  %v3844_v59 = vadd.f32 -1.0, %v4043_v25  ;;  %v1660_v1 = vadd.f32 %v1607_v18, %v4633_v50 }
 0x255   :  { %4044 = vpow2.f32 %v2635_v9  ;;  %v2233_v41 = vadd.f32 %v2178_v34, %v1946_v17 }
 0x256   :  { %v2468_v7 = vpop.f32.mrf.mxu0  ;;  %v2714_v28 = vmul.f32 1.6732632, %v3844_v59 }
 0x257   :  { %v2520_v13 = vadd.f32 %v2465_v32, %v2233_v41 }
 0x258   :  { %v2746_v58 = vsel %vm2586_vm1, %v2554_v22, %v2714_v28 }
 0x259   :  { %v5015_v44 = vmul.f32 1.050701, %v2746_v58  ;;  %v2556_v42 = vadd.f32 %v4809_v3, %v2520_v13  ;;  %v1894_v31 = vpop.f32.mrf.mxu2 }
 0x25a   :  { %v1947_v21 = vadd.f32 %v1894_v31, %v1660_v1 }
 0x25b   :  { %v4045_v57 = vpop.eup %4044  ;;  %v2818_v51 = vmax.f32 %v4994_v45, %v5015_v44  ;;  %v2637_v63 = vmul.f32 1.442695, %v2556_v42  ;;  %v1609_v49 = vpop.f32.mrf.mxu1  ;;  %vm2588_vm3 = vcmp.gt.f32.partialorder %v2556_v42, 0.0 }
 0x25c   :  { %v2181_v46 = vpop.f32.mrf.mxu3  ;;  %v3845_v5 = vadd.f32 -1.0, %v4045_v57  ;;  %v1661_v6 = vadd.f32 %v1609_v49, %v4650_v52 }
 0x25d   :  { %4046 = vpow2.f32 %v2637_v63  ;;  %v2234_v50 = vadd.f32 %v2181_v46, %v1947_v21 }
 0x25e   :  { %v2470_v53 = vpop.f32.mrf.mxu0  ;;  %v2715_v22 = vmul.f32 1.6732632, %v3845_v5 }
 0x25f   :  { %v2521_v38 = vadd.f32 %v2468_v7, %v2234_v50 }
 0x260   :  { %v2747_v36 = vsel %vm2587_vm2, %v2555_v16, %v2715_v22 }
 0x261   :  { %v2779_v33 = vmul.f32 1.050701, %v2747_v36  ;;  %v2557_v26 = vadd.f32 %v4809_v3, %v2521_v38  ;;  %v1896_v15 = vpop.f32.mrf.mxu2 }
 0x262   :  { %v1948_v32 = vadd.f32 %v1896_v15, %v1661_v6 }
 0x263   :  { %v4047_v30 = vpop.eup %4046  ;;  %v5025_v23 = vmax.f32 %v2797_v29, %v2779_v33  ;;  %v2639_v61 = vmul.f32 1.442695, %v2557_v26  ;;  %v1612_v52 = vpop.f32.mrf.mxu1  ;;  %vm2589_vm4 = vcmp.gt.f32.partialorder %v2557_v26, 0.0 }
 0x264   :  { %v2183_v20 = vpop.f32.mrf.mxu3  ;;  %v3846_v62 = vadd.f32 -1.0, %v4047_v30  ;;  %v1662_v59 = vadd.f32 %v1612_v52, %v4655_v35 }
 0x265   :  { %4048 = vpow2.f32 %v2639_v61  ;;  %v2235_v10 = vadd.f32 %v2183_v20, %v1948_v32 }
 0x266   :  { %v2473_v19 = vpop.f32.mrf.mxu0  ;;  %v2716_v25 = vmul.f32 1.6732632, %v3846_v62 }
 0x267   :  { %v2522_v16 = vadd.f32 %v2470_v53, %v2235_v10 }
 0x268   :  { %v2748_v9 = vsel %vm2588_vm3, %v2556_v42, %v2716_v25 }
 0x269   :  { %v2780_v17 = vmul.f32 1.050701, %v2748_v9  ;;  %v2558_v34 = vadd.f32 %v4809_v3, %v2522_v16  ;;  %v1899_v27 = vpop.f32.mrf.mxu2 }
 0x26a   :  { %v1949_v41 = vadd.f32 %v1899_v27, %v1662_v59 }
 0x26b   :  { %v4049_v60 = vpop.eup %4048  ;;  %v5032_v29 = vmax.f32 %v2804_v48, %v2780_v17  ;;  %v2641_v18 = vmul.f32 1.442695, %v2558_v34  ;;  %v1614_v28 = vpop.f32.mrf.mxu1  ;;  %vm2590_vm5 = vcmp.gt.f32.partialorder %v2558_v34, 0.0 }
 0x26c   :  { %v2186_v1 = vpop.f32.mrf.mxu3  ;;  %v3847_v7 = vadd.f32 -1.0, %v4049_v60  ;;  %v1663_v21 = vadd.f32 %v1614_v28, %v4672_v0 }
 0x26d   :  { %4050 = vpow2.f32 %v2641_v18  ;;  %v2236_v13 = vadd.f32 %v2186_v1, %v1949_v41 }
 0x26e   :  { %v2475_v58 = vpop.f32.mrf.mxu0  ;;  %v2717_v42 = vmul.f32 1.6732632, %v3847_v7 }
 0x26f   :  { %v2523_v31 = vadd.f32 %v2473_v19, %v2236_v13 }
 0x270   :  { %v2749_v57 = vsel %vm2589_vm4, %v2557_v26, %v2717_v42 }
 0x271   :  { %v2781_v35 = vmul.f32 1.050701, %v2749_v57  ;;  %v2559_v63 = vadd.f32 %v4809_v3, %v2523_v31  ;;  %v1901_v11 = vpop.f32.mrf.mxu2 }
 0x272   :  { %v1950_v5 = vadd.f32 %v1901_v11, %v1663_v21 }
 0x273   :  { %v4051_v37 = vpop.eup %4050  ;;  %v5039_v48 = vmax.f32 %v2811_v47, %v2781_v35  ;;  %v2643_v46 = vmul.f32 1.442695, %v2559_v63  ;;  %v1617_v6 = vpop.f32.mrf.mxu1  ;;  %vm2591_vm6 = vcmp.gt.f32.partialorder %v2559_v63, 0.0 }
 0x274   :  { %v2188_v49 = vpop.f32.mrf.mxu3  ;;  %v3848_v50 = vadd.f32 -1.0, %v4051_v37  ;;  %v1664_v15 = vadd.f32 %v1617_v6, %v4677_v55 }
 0x275   :  { %4052 = vpow2.f32 %v2643_v46  ;;  %v2237_v53 = vadd.f32 %v2188_v49, %v1950_v5 }
 0x276   :  { %v2478_v22 = vpop.f32.mrf.mxu0  ;;  %v2718_v38 = vmul.f32 1.6732632, %v3848_v50 }
 0x277   :  { %v2524_v36 = vadd.f32 %v2475_v58, %v2237_v53 }
 0x278   :  { %v2750_v33 = vsel %vm2590_vm5, %v2558_v34, %v2718_v38 }
 0x279   :  { %v2782_v0 = vmul.f32 1.050701, %v2750_v33  ;;  %v2560_v26 = vadd.f32 %v4809_v3, %v2524_v36  ;;  %v1904_v54 = vpop.f32.mrf.mxu2 }
 0x27a   :  { %v1951_v61 = vadd.f32 %v1904_v54, %v1664_v15 }
 0x27b   :  { %v4053_v8 = vpop.eup %4052  ;;  %v5046_v47 = vmax.f32 %v2818_v51, %v2782_v0  ;;  %v2645_v30 = vmul.f32 1.442695, %v2560_v26  ;;  %v1619_v62 = vpop.f32.mrf.mxu1  ;;  %vm2592_vm7 = vcmp.gt.f32.partialorder %v2560_v26, 0.0 }
 0x27c   :  { %v2191_v32 = vpop.f32.mrf.mxu3  ;;  %v3849_v20 = vadd.f32 -1.0, %v4053_v8  ;;  %v1665_v45 = vadd.f32 %v1619_v62, %v4694_v12 }
 0x27d   :  { %4054 = vpow2.f32 %v2645_v30  ;;  %v2238_v52 = vadd.f32 %v2191_v32, %v1951_v61 }
 0x27e   :  { %v2480_v10 = vpop.f32.mrf.mxu0  ;;  %v2719_v19 = vmul.f32 1.6732632, %v3849_v20 }
 0x27f   :  { %v2525_v25 = vadd.f32 %v2478_v22, %v2238_v52 }
 0x280   :  { %v2751_v16 = vsel %vm2591_vm6, %v2559_v63, %v2719_v19 }
 0x281   :  { %v5048_v55 = vmul.f32 1.050701, %v2751_v16  ;;  %v2561_v9 = vadd.f32 %v4809_v3, %v2525_v25  ;;  %v1906_v44 = vpop.f32.mrf.mxu2 }
 0x282   :  { %v1952_v59 = vadd.f32 %v1906_v44, %v1665_v45 }
 0x283   :  { %v4055_v51 = vpop.eup %4054  ;;  %v2799_v17 = vmax.f32 %v5025_v23, %v5048_v55  ;;  %v2647_v34 = vmul.f32 1.442695, %v2561_v9  ;;  %v1622_v18 = vpop.f32.mrf.mxu1  ;;  %vm2593_vm8 = vcmp.gt.f32.partialorder %v2561_v9, 0.0 }
 0x284   :  { %v2193_v27 = vpop.f32.mrf.mxu3  ;;  %v3850_v60 = vadd.f32 -1.0, %v4055_v51  ;;  %v1666_v42 = vadd.f32 %v1622_v18, %v4699_v39 }
 0x285   :  { %4056 = vpow2.f32 %v2647_v34  ;;  %v2239_v41 = vadd.f32 %v2193_v27, %v1952_v59 }
 0x286   :  { %v2483_v1 = vpop.f32.mrf.mxu0  ;;  %v2720_v7 = vmul.f32 1.6732632, %v3850_v60 }
 0x287   :  { %v2526_v28 = vadd.f32 %v2480_v10, %v2239_v41 }
 0x288   :  { %v2752_v13 = vsel %vm2592_vm7, %v2560_v26, %v2720_v7 }
 0x289   :  { %v5054_v58 = vmul.f32 1.050701, %v2752_v13  ;;  %v2562_v12 = vadd.f32 %v4809_v3, %v2526_v28  ;;  %v1909_v31 = vpop.f32.mrf.mxu2 }
 0x28a   :  { %v1953_v21 = vadd.f32 %v1909_v31, %v1666_v42 }
 0x28b   :  { %v4057_v57 = vpop.eup %4056  ;;  %v2806_v35 = vmax.f32 %v5032_v29, %v5054_v58  ;;  %v2649_v63 = vmul.f32 1.442695, %v2562_v12  ;;  %v1624_v46 = vpop.f32.mrf.mxu1  ;;  %vm2594_vm9 = vcmp.gt.f32.partialorder %v2562_v12, 0.0 }
 0x28c   :  { %v2196_v11 = vpop.f32.mrf.mxu3  ;;  %v3851_v37 = vadd.f32 -1.0, %v4057_v57  ;;  %v1667_v38 = vadd.f32 %v1624_v46, %v4716_v24 }
 0x28d   :  { %4058 = vpow2.f32 %v2649_v63  ;;  %v2240_v5 = vadd.f32 %v2196_v11, %v1953_v21 }
 0x28e   :  { %v2485_v49 = vpop.f32.mrf.mxu0  ;;  %v2721_v50 = vmul.f32 1.6732632, %v3851_v37 }
 0x28f   :  { %v2527_v6 = vadd.f32 %v2483_v1, %v2240_v5 }
 0x290   :  { %v2753_v53 = vsel %vm2593_vm8, %v2561_v9, %v2721_v50 }
 0x291   :  { %v5060_v22 = vmul.f32 1.050701, %v2753_v53  ;;  %v2563_v39 = vadd.f32 %v4809_v3, %v2527_v6  ;;  %v1911_v36 = vpop.f32.mrf.mxu2 }
 0x292   :  { %v1954_v15 = vadd.f32 %v1911_v36, %v1667_v38 }
 0x293   :  { %v4059_v33 = vpop.eup %4058  ;;  %v2813_v0 = vmax.f32 %v5039_v48, %v5060_v22  ;;  %v2651_v26 = vmul.f32 1.442695, %v2563_v39  ;;  %v1627_v30 = vpop.f32.mrf.mxu1  ;;  %vm2595_vm10 = vcmp.gt.f32.partialorder %v2563_v39, 0.0 }
 0x294   :  { %v2198_v54 = vpop.f32.mrf.mxu3  ;;  %v3852_v8 = vadd.f32 -1.0, %v4059_v33  ;;  %v1668_v19 = vadd.f32 %v1627_v30, %v4721_v2 }
 0x295   :  { %4060 = vpow2.f32 %v2651_v26  ;;  %v2241_v61 = vadd.f32 %v2198_v54, %v1954_v15 }
 0x296   :  { %v2488_v32 = vpop.f32.mrf.mxu0  ;;  %v2722_v20 = vmul.f32 1.6732632, %v3852_v8 }
 0x297   :  { %v2528_v62 = vadd.f32 %v2485_v49, %v2241_v61 }
 0x298   :  { %v2754_v52 = vsel %vm2594_vm9, %v2562_v12, %v2722_v20 }
 0x299   :  { %v5066_v10 = vmul.f32 1.050701, %v2754_v52  ;;  %v2564_v24 = vadd.f32 %v4809_v3, %v2528_v62  ;;  %v1914_v25 = vpop.f32.mrf.mxu2 }
 0x29a   :  { %v1955_v44 = vadd.f32 %v1914_v25, %v1668_v19 }
 0x29b   :  { %v4061_v16 = vpop.eup %4060  ;;  %v2820_v9 = vmax.f32 %v5046_v47, %v5066_v10  ;;  %v2653_v45 = vmul.f32 1.442695, %v2564_v24  ;;  %v1629_v59 = vpop.f32.mrf.mxu1  ;;  %vm2596_vm11 = vcmp.gt.f32.partialorder %v2564_v24, 0.0 }
 0x29c   :  { %v2201_v51 = vpop.f32.mrf.mxu3  ;;  %v3853_v34 = vadd.f32 -1.0, %v4061_v16  ;;  %v1669_v28 = vadd.f32 %v1629_v59, %v4738_v56 }
 0x29d   :  { %4062 = vpow2.f32 %v2653_v45  ;;  %v2242_v27 = vadd.f32 %v2201_v51, %v1955_v44 }
 0x29e   :  { %v2723_v60 = vmul.f32 1.6732632, %v3853_v34  ;;  %v2490_v18 = vpop.f32.mrf.mxu0 }
 0x29f   :  { %v2529_v41 = vadd.f32 %v2488_v32, %v2242_v27 }
 0x2a0   :  { %v2755_v1 = vsel %vm2595_vm10, %v2563_v39, %v2723_v60 }
 0x2a1   :  { %v2787_v7 = vmul.f32 1.050701, %v2755_v1  ;;  %v2565_v2 = vadd.f32 %v4809_v3, %v2529_v41  ;;  %v1916_v13 = vpop.f32.mrf.mxu2 }
 0x2a2   :  { %v1956_v57 = vadd.f32 %v1916_v13, %v1669_v28 }
 0x2a3   :  { %v4063_v12 = vpop.eup %4062  ;;  %v5077_v42 = vmax.f32 %v2799_v17, %v2787_v7  ;;  %v2655_v31 = vmul.f32 1.442695, %v2565_v2  ;;  %v1632_v11 = vpop.f32.mrf.mxu1  ;;  %vm2597_vm12 = vcmp.gt.f32.partialorder %v2565_v2, 0.0 }
 0x2a4   :  { %v2203_v63 = vpop.f32.mrf.mxu3  ;;  %v3854_v21 = vadd.f32 -1.0, %v4063_v12  ;;  %v1670_v53 = vadd.f32 %v1632_v11, %v4743_v43  ;;  %v4076_v43 = vld [vmem:[%s5108_s2] ss:$0 sm:$0xff]  ;;  %s4103_s2 = smov [#allocation2]  }
 0x2a5   :  { %4064 = vpow2.f32 %v2655_v31  ;;  %v2243_v37 = vadd.f32 %v2203_v63, %v1956_v57  ;;  %s2831_s14 = sshll.u32 %s4103_s2, 4  ;;  %s2832_s14 = int_to_ptr.vmem [resolvable:$true] %s2831_s14 }
 0x2a6   :  { %v2724_v46 = vmul.f32 1.6732632, %v3854_v21  ;;  %v2493_v50 = vpop.f32.mrf.mxu0 }
 0x2a7   :  { %v2530_v5 = vadd.f32 %v2490_v18, %v2243_v37 }
 0x2a8   :  { %v2756_v49 = vsel %vm2596_vm11, %v2564_v24, %v2724_v46 }
 0x2a9   :  { %v2788_v56 = vmul.f32 1.050701, %v2756_v49  ;;  %v2566_v6 = vadd.f32 %v4809_v3, %v2530_v5  ;;  %v1919_v23 = vpop.f32.mrf.mxu2 }
 0x2aa   :  { %v1957_v38 = vadd.f32 %v1919_v23, %v1670_v53 }
 0x2ab   :  { %v4065_v55 = vpop.eup %4064  ;;  %v5084_v17 = vmax.f32 %v2806_v35, %v2788_v56  ;;  %v2657_v39 = vmul.f32 1.442695, %v2566_v6  ;;  %v1634_v26 = vpop.f32.mrf.mxu1  ;;  %vm2598_vm13 = vcmp.gt.f32.partialorder %v2566_v6, 0.0 }
 0x2ac   :  { %v2206_v36 = vpop.f32.mrf.mxu3  ;;  %v3855_v33 = vadd.f32 -1.0, %v4065_v55  ;;  %v1671_v29 = vadd.f32 %v1634_v26, %v4760_v4 }
 0x2ad   :  { %4066 = vpow2.f32 %v2657_v39  ;;  %v2244_v15 = vadd.f32 %v2206_v36, %v1957_v38 }
 0x2ae   :  { %v2725_v54 = vmul.f32 1.6732632, %v3855_v33  ;;  %v2495_v58 = vpop.f32.mrf.mxu0 }
 0x2af   :  { %v2531_v8 = vadd.f32 %v2493_v50, %v2244_v15 }
 0x2b0   :  { %v2757_v3 = vsel %vm2597_vm12, %v2565_v2, %v2725_v54 }
 0x2b1   :  { %v2789_v30 = vmul.f32 1.050701, %v2757_v3  ;;  %v2567_v61 = vadd.f32 %v4076_v43, %v2531_v8  ;;  %v1921_v35 = vpop.f32.mrf.mxu2 }
 0x2b2   :  { %v1958_v52 = vadd.f32 %v1921_v35, %v1671_v29 }
 0x2b3   :  { %v4067_v32 = vpop.eup %4066  ;;  %v5093_v20 = vmax.f32 %v2813_v0, %v2789_v30  ;;  %v2659_v62 = vmul.f32 1.442695, %v2567_v61  ;;  %v1637_v25 = vpop.f32.mrf.mxu1  ;;  %vm2599_vm14 = vcmp.gt.f32.partialorder %v2567_v61, 0.0 }
 0x2b4   :  { %v2208_v24 = vpop.f32.mrf.mxu3  ;;  %v3856_v19 = vadd.f32 -1.0, %v4067_v32  ;;  %v1672_v59 = vadd.f32 %v1637_v25, %v4765_v14 }
 0x2b5   :  { %4068 = vpow2.f32 %v2659_v62  ;;  %v2245_v16 = vadd.f32 %v2208_v24, %v1958_v52 }
 0x2b6   :  { %v2726_v45 = vmul.f32 1.6732632, %v3856_v19  ;;  %v2498_v1 = vpop.f32.mrf.mxu0 }
 0x2b7   :  { %v2532_v44 = vadd.f32 %v2495_v58, %v2245_v16 }
 0x2b8   :  { %v2758_v51 = vsel %vm2598_vm13, %v2566_v6, %v2726_v45 }
 0x2b9   :  { %v2790_v4 = vmul.f32 1.050701, %v2758_v51  ;;  %v2568_v34 = vadd.f32 %v4076_v43, %v2532_v44  ;;  %v1924_v27 = vpop.f32.mrf.mxu2 }
 0x2ba   :  { %v1959_v0 = vadd.f32 %v1924_v27, %v1672_v59 }
 0x2bb   :  { %v4069_v60 = vpop.eup %4068  ;;  %v2821_v48 = vmax.f32 %v2820_v9, %v2790_v4  ;;  %v2661_v22 = vmul.f32 1.442695, %v2568_v34  ;;  %v1639_v28 = vpop.f32.mrf.mxu1  ;;  %vm2600_vm15 = vcmp.gt.f32.partialorder %v2568_v34, 0.0 }
 0x2bc   :  { %v2211_v18 = vpop.f32.mrf.mxu3  ;;  %v3857_v41 = vadd.f32 -1.0, %v4069_v60  ;;  %v1673_v57 = vadd.f32 %v1639_v28, %v4783_v40 }
 0x2bd   :  { %4070 = vpow2.f32 %v2661_v22  ;;  %v2246_v7 = vadd.f32 %v2211_v18, %v1959_v0 }
 0x2be   :  { %v2727_v2 = vmul.f32 1.6732632, %v3857_v41  ;;  %v2500_v49 = vpop.f32.mrf.mxu0 }
 0x2bf   :  { %v2533_v13 = vadd.f32 %v2498_v1, %v2246_v7 }
 0x2c0   :  { %v2759_v12 = vsel %vm2599_vm14, %v2567_v61, %v2727_v2 }
 0x2c1   :  { %v2791_v31 = vmul.f32 1.050701, %v2759_v12  ;;  %v2569_v14 = vadd.f32 %v4076_v43, %v2533_v13  ;;  %v1926_v63 = vpop.f32.mrf.mxu2 }
 0x2c2   :  { %v1960_v9 = vadd.f32 %v1926_v63, %v1673_v57 }
 0x2c3   :  { %v4071_v21 = vpop.eup %4070  ;;  %v2801_v47 = vmax.f32 %v5077_v42, %v2791_v31  ;;  %v2663_v10 = vmul.f32 1.442695, %v2569_v14  ;;  %vm2601_vm0 = vcmp.gt.f32.partialorder %v2569_v14, 0.0 }
 0x2c4   :  { %v3858_v11 = vadd.f32 -1.0, %v4071_v21  ;;  %v2213_v37 = vpop.f32.mrf.mxu3 }
 0x2c5   :  { %2823 = vst [vmem:[#allocation2] sm:$0xff] %v2801_v47  ;;  %4072 = vpow2.f32 %v2663_v10  ;;  %v2247_v46 = vadd.f32 %v2213_v37, %v1960_v9 }
 0x2c6   :  { %v2728_v5 = vmul.f32 1.6732632, %v3858_v11 }
 0x2c7   :  { %v2534_v50 = vadd.f32 %v2500_v49, %v2247_v46 }
 0x2c8   :  { %v2760_v56 = vsel %vm2600_vm15, %v2568_v34, %v2728_v5 }
 0x2c9   :  { %v2792_v6 = vmul.f32 1.050701, %v2760_v56  ;;  %v2570_v53 = vadd.f32 %v4076_v43, %v2534_v50 }
 0x2cb   :  { %v4073_v23 = vpop.eup %4072  ;;  %v2808_v40 = vmax.f32 %v5084_v17, %v2792_v6  ;;  %v2665_v55 = vmul.f32 1.442695, %v2570_v53  ;;  %vm2602_vm1 = vcmp.gt.f32.partialorder %v2570_v53, 0.0 }
 0x2cc   :  { %v3859_v39 = vadd.f32 -1.0, %v4073_v23 }
 0x2cd   :  { %2824 = vst [vmem:[#allocation2 + $0x8] sm:$0xff] %v2808_v40  ;;  %4074 = vpow2.f32 %v2665_v55 }
 0x2ce   :  { %v2729_v42 = vmul.f32 1.6732632, %v3859_v39 }
 0x2d0   :  { %v2761_v38 = vsel %vm2601_vm0, %v2569_v14, %v2729_v42 }
 0x2d1   :  { %v2793_v36 = vmul.f32 1.050701, %v2761_v38 }
 0x2d3   :  { %v4075_v33 = vpop.eup %4074  ;;  %v2815_v26 = vmax.f32 %v5093_v20, %v2793_v36 }
 0x2d4   :  { %v3860_v15 = vadd.f32 -1.0, %v4075_v33 }
 0x2d5   :  { %2825 = vst [vmem:[#allocation2 + $0x10] sm:$0xff] %v2815_v26 }
 0x2d6   :  { %v2730_v54 = vmul.f32 1.6732632, %v3860_v15 }
 0x2d8   :  { %v2762_v17 = vsel %vm2602_vm1, %v2570_v53, %v2730_v54 }
 0x2d9   :  { %v2794_v8 = vmul.f32 1.050701, %v2762_v17 }
 0x2db   :  { %v2822_v3 = vmax.f32 %v2821_v48, %v2794_v8 }
 0x2dd   :  { %2826 = vst [vmem:[#allocation2 + $0x18] sm:$0xff] %v2822_v3 }
 0x2de   :  { %2839 = dma.vmem_to_hbm [thread:$0]  %s2832_s14, 512, %s2834_s17, [#allocation3], %s4104_s18, %s4104_s18, %s4105_s19  }
 0x2df   :  { %4101 = dma.done.wait [#allocation3], 512  }
 0x2e0   :  { %4102 = vsyncadd [#allocation3], 4294966784 }
 0x2e1   :  { %2844 = vsyncpa [#allocation3], 1 }

</bundles_post_ra>
